<compile_context>
chip_gen: v6e
topology: v6e:2x2x1
jax: 0.10.0
libtpu: 0.0.40
codegen_flags: <defaults>
</compile_context>

<pallas_src>
import functools

import numpy as np

import jax
import jax.numpy as jnp
from jax.experimental import pallas as pl
from jax.experimental.pallas import tpu as pltpu


# ----------------------------------------------------------------------------
# Host-side (init-time) weight preprocessing
# ----------------------------------------------------------------------------
def _row_conv_matrix(w_oihw, w_in):
    """kh-folded matmul matrix for a 5x5 'same' conv on a (W*Cin)-lane row
    layout.  Row index = kh*(W*Cin) + w_src*Cin + ci; output columns are
    parity-permuted (even output-w first) so the in-kernel 2x2 max-pool over W
    is a lane-half max.  W zero-padding is folded in (out-of-range kw taps
    dropped); H zero-padding is handled by the LHS assembly."""
    c_out, c_in, k_h, k_w = w_oihw.shape
    pad = (k_w - 1) // 2
    half = (w_in // 2) * c_out
    wmat = np.asarray(w_oihw, np.float32)
    a = np.zeros((k_h, w_in * c_in, w_in * c_out), np.float32)
    for kh in range(k_h):
        for kw in range(k_w):
            blk = wmat[:, :, kh, kw].T                      # (c_in, c_out)
            for w in range(w_in):
                w_src = w + kw - pad
                if 0 <= w_src < w_in:
                    j = w_src * c_in
                    m = (w % 2) * half + (w // 2) * c_out
                    a[kh, j:j + c_in, m:m + c_out] = blk
    return a.reshape(k_h * w_in * c_in, w_in * c_out)       # (5*W*Cin, W*Cout)


def _fc1_matrix(w_fc1, c2, h4, w4, hidden):
    """Re-permute the PyTorch Linear(feat->hidden) weight so the kernel's
    lane-packed (N, h4*w4*c2) pooled features (PyTorch NCHW .view(N,-1) order
    re-laid out as [row j | pooled-w | channel]) are consumed by one matmul."""
    wt = np.asarray(w_fc1, np.float32).T.reshape(c2, h4, w4, hidden)
    return np.transpose(wt, (1, 2, 0, 3)).reshape(h4 * w4 * c2, hidden)


def init_params(key, img_size=(16, 16), out_channels=32):
    h, w = img_size
    assert h % 4 == 0 and w % 4 == 0
    h4, w4 = h // 4, w // 4
    c_in, c1, c2, hidden = 3, 8, 16, 128
    feat = c2 * h4 * w4
    ks = jax.random.split(key, 10)

    def u(k, shape, fan_in):
        bound = 1.0 / float(fan_in) ** 0.5
        return np.asarray(jax.random.uniform(k, shape, jnp.float32,
                                             -bound, bound))

    raw = dict(
        w_conv1=u(ks[0], (c1, c_in, 5, 5), c_in * 25),
        b_conv1=u(ks[1], (c1,), c_in * 25),
        w_conv2=u(ks[2], (c2, c1, 5, 5), c1 * 25),
        b_conv2=u(ks[3], (c2,), c1 * 25),
        w_fc1=u(ks[4], (hidden, feat), feat),
        b_fc1=u(ks[5], (hidden,), feat),
        w_fc2=u(ks[6], (hidden, hidden), hidden),
        b_fc2=u(ks[7], (hidden,), hidden),
        w_fc3=u(ks[8], (out_channels, hidden), hidden),
        b_fc3=u(ks[9], (out_channels,), hidden),
        alpha=np.full((4,), 0.25, np.float32),            # PReLU defaults
        gamma1=np.ones((c1,), np.float32), beta1=np.zeros((c1,), np.float32),
        gamma2=np.ones((c2,), np.float32), beta2=np.zeros((c2,), np.float32),
    )

    lanes1, lanes2 = w * c1, (w // 2) * c2                 # 128, 128 for 16x16
    vp_w = max(lanes1, lanes2, hidden)
    vp = np.zeros((13, vp_w), np.float32)
    vp[0, :lanes1] = np.tile(raw["b_conv1"], lanes1 // c1)
    vp[1, :lanes1] = np.tile(raw["gamma1"], lanes1 // c1)
    vp[2, :lanes1] = np.tile(raw["beta1"], lanes1 // c1)
    vp[3, :lanes2] = np.tile(raw["b_conv2"], lanes2 // c2)
    vp[4, :lanes2] = np.tile(raw["gamma2"], lanes2 // c2)
    vp[5, :lanes2] = np.tile(raw["beta2"], lanes2 // c2)
    vp[6, :hidden] = raw["b_fc1"]
    vp[7, :hidden] = raw["b_fc2"]
    vp[8, :out_channels] = raw["b_fc3"]
    vp[9:13, :] = raw["alpha"][:, None]

    kernel_params = dict(
        a1=jnp.asarray(_row_conv_matrix(raw["w_conv1"], w)),        # (240,128)
        a2=jnp.asarray(_row_conv_matrix(raw["w_conv2"], w // 2)),   # (320,128)
        wfc1=jnp.asarray(_fc1_matrix(raw["w_fc1"], c2, h4, w4, hidden)),
        wfc2=jnp.asarray(raw["w_fc2"].T.copy()),
        wfc3=jnp.asarray(raw["w_fc3"].T.copy()),
        vparams=jnp.asarray(vp),
    )
    return dict(raw={k: jnp.asarray(v) for k, v in raw.items()},
                kernel=kernel_params)


# ----------------------------------------------------------------------------
# The single fused Pallas kernel
# ----------------------------------------------------------------------------
def _make_kernel(n, h, w, c_in, c1, c2, hidden, out_ch):
    h2, w2 = h // 2, w // 2
    h4 = h2 // 2
    lanes1, lanes2 = w * c1, w2 * c2
    half1, half2 = (w // 2) * c1, (w2 // 2) * c2
    assert lanes1 % c1 == 0 and (lanes1 // c1) & (lanes1 // c1 - 1) == 0
    assert lanes2 % c2 == 0 and (lanes2 // c2) & (lanes2 // c2 - 1) == 0
    inv_cnt1 = 1.0 / float(n * h * w)
    inv_cnt2 = 1.0 / float(n * h2 * w2)
    eps = 1e-5
    f32 = jnp.float32

    def lane_channel_sum(v, c, lanes):
        # Log-time XLU roll/add tree: afterwards every lane holds the sum over
        # all lanes with the same channel (channel == lane % c).
        s = v
        shift = c
        while shift < lanes:
            s = s + pltpu.roll(s, shift, 1)
            shift *= 2
        return s

    def batchnorm(y, c, lanes, inv_cnt, gamma, beta):
        # Training-mode batch stats (biased variance), eps=1e-5.
        mean = lane_channel_sum(jnp.sum(y, axis=0, keepdims=True),
                                c, lanes) * inv_cnt
        yc = y - mean
        var = lane_channel_sum(jnp.sum(yc * yc, axis=0, keepdims=True),
                               c, lanes) * inv_cnt
        return yc * jax.lax.rsqrt(var + eps) * gamma + beta

    def kernel(x1f_ref, a1_ref, a2_ref, wfc1_ref, wfc2_ref, wfc3_ref, vp_ref,
               out_ref, y1_ref, lhs2_ref, y2_ref, p4_ref):
        # ---- conv1 (kh folded into K, whole batch in M) + PReLU + BN ----
        y = jnp.dot(x1f_ref[...], a1_ref[...], preferred_element_type=f32)
        y = y + vp_ref[0:1, :lanes1]
        y = jnp.where(y >= 0.0, y, vp_ref[9:10, :lanes1] * y)
        y1_ref[...] = batchnorm(y, c1, lanes1, inv_cnt1,
                                vp_ref[1:2, :lanes1], vp_ref[2:3, :lanes1])

        # ---- MaxPool 2x2 and scatter into the kh-folded conv2 LHS ----
        # lhs2[i*h2 + r, kh*half1 : (kh+1)*half1] = pool1[i, r+kh-2]  (0 if OOB)
        lhs2_ref[...] = jnp.zeros_like(lhs2_ref)
        for i in range(n):
            ev = y1_ref[pl.ds(i * h, h2, stride=2), :]          # even rows
            od = y1_ref[pl.ds(i * h + 1, h2, stride=2), :]      # odd rows
            hmax = jnp.maximum(ev, od)                          # (h2, lanes1)
            pooled = jnp.maximum(hmax[:, :half1], hmax[:, half1:])  # (h2, half1)
            base = i * h2
            for kh in range(5):
                dlo, dhi = max(0, 2 - kh), min(h2, h2 + 2 - kh)
                slo = dlo + kh - 2
                lhs2_ref[base + dlo:base + dhi,
                         kh * half1:(kh + 1) * half1] = pooled[slo:slo + (dhi - dlo), :]

        # ---- conv2 (kh folded into K, whole batch in M) + PReLU + BN ----
        y = jnp.dot(lhs2_ref[...], a2_ref[...], preferred_element_type=f32)
        y = y + vp_ref[3:4, :lanes2]
        y = jnp.where(y >= 0.0, y, vp_ref[10:11, :lanes2] * y)
        y2_ref[...] = batchnorm(y, c2, lanes2, inv_cnt2,
                                vp_ref[4:5, :lanes2], vp_ref[5:6, :lanes2])

        # ---- MaxPool 2x2, lane-pack into the contiguous fc1 LHS (n, feat) ----
        for i in range(n):
            ev = y2_ref[pl.ds(i * h2, h4, stride=2), :]
            od = y2_ref[pl.ds(i * h2 + 1, h4, stride=2), :]
            hmax = jnp.maximum(ev, od)                          # (h4, lanes2)
            pooled = jnp.maximum(hmax[:, :half2], hmax[:, half2:])  # (h4, half2)
            for j in range(h4):
                p4_ref[i:i + 1, j * half2:(j + 1) * half2] = pooled[j:j + 1, :]

        # ---- FC head + L2 normalization ----
        f1 = jnp.dot(p4_ref[...], wfc1_ref[...], preferred_element_type=f32)
        f1 = f1 + vp_ref[6:7, :hidden]
        f1 = jnp.where(f1 >= 0.0, f1, vp_ref[11:12, :hidden] * f1)

        f2 = jnp.dot(f1, wfc2_ref[...], preferred_element_type=f32)
        f2 = f2 + vp_ref[7:8, :hidden]
        f2 = jnp.where(f2 >= 0.0, f2, vp_ref[12:13, :hidden] * f2)

        emb = jnp.dot(f2, wfc3_ref[...], preferred_element_type=f32)
        emb = emb + vp_ref[8:9, :out_ch]
        # output /= output.pow(2).sum(1, keepdim=True).sqrt()
        out_ref[...] = emb * jax.lax.rsqrt(jnp.sum(emb * emb, axis=1,
                                                   keepdims=True))

    return kernel


def _vmem_spec(shape):
    nd = len(shape)
    return pl.BlockSpec(tuple(shape), lambda i, _nd=nd: (0,) * _nd)


# ----------------------------------------------------------------------------
# Forward pass (EmbeddingNetL2.forward): one pallas_call
# ----------------------------------------------------------------------------
def embedding_net_l2(params, x_nchw):
    kp = params["kernel"]
    n, c_in, h, w = x_nchw.shape
    c1, c2 = 8, 16
    hidden = kp["wfc2"].shape[0]
    out_ch = kp["wfc3"].shape[1]
    h2, w2 = h // 2, w // 2
    h4, w4 = h2 // 2, w2 // 2
    feat = c2 * h4 * w4

    # Wrapper-side work is layout plumbing only: NCHW -> NHWC, zero-pad H by 2,
    # and fold the 5 kh taps into the lane/contraction dim so conv1 is a single
    # MXU matmul in the kernel (input is ~30 KiB at this size).
    x = jnp.transpose(x_nchw, (0, 2, 3, 1)).astype(jnp.float32)   # (n,h,w,cin)
    xp = jnp.pad(x, ((0, 0), (2, 2), (0, 0), (0, 0)))             # (n,h+4,w,cin)
    x1f = jnp.concatenate(
        [xp[:, kh:kh + h].reshape(n, h, w * c_in) for kh in range(5)],
        axis=-1).reshape(n * h, 5 * w * c_in)                     # (n*h, 240)

    kernel = _make_kernel(n, h, w, c_in, c1, c2, hidden, out_ch)
    args = (x1f, kp["a1"], kp["a2"], kp["wfc1"], kp["wfc2"], kp["wfc3"],
            kp["vparams"])

    # TODO(synk): for large batches on v7x, add a leading "parallel" batch-tile
    # grid axis (two-pass BN for the cross-image batch stats) to use both TCs.
    return pl.pallas_call(
        kernel,
        grid=(1,),
        in_specs=[_vmem_spec(a.shape) for a in args],
        out_specs=_vmem_spec((n, out_ch)),
        out_shape=jax.ShapeDtypeStruct((n, out_ch), jnp.float32),
        scratch_shapes=[
            pltpu.VMEM((n * h, w * c1), jnp.float32),         # conv1+BN acts
            pltpu.VMEM((n * h2, 5 * w2 * c1), jnp.float32),   # kh-folded conv2 LHS
            pltpu.VMEM((n * h2, w2 * c2), jnp.float32),       # conv2+BN acts
            pltpu.VMEM((n, feat), jnp.float32),               # fc1 LHS (lane-packed)
        ],
        compiler_params=pltpu.CompilerParams(
            dimension_semantics=("arbitrary",)),
    )(*args)


# ----------------------------------------------------------------------------
# Pure-JAX (XLA) reference of the PyTorch module, for validation
# ----------------------------------------------------------------------------
def reference_forward(raw, x_nchw):
    eps = 1e-5
    hp = jax.lax.Precision.HIGHEST

    def conv_block(x, wgt, b, alpha, gamma, beta):
        y = jax.lax.conv_general_dilated(
            x, wgt, window_strides=(1, 1), padding=((2, 2), (2, 2)),
            dimension_numbers=("NCHW", "OIHW", "NCHW"), precision=hp)
        y = y + b[None, :, None, None]
        y = jnp.where(y >= 0.0, y, alpha * y)                 # PReLU
        mean = jnp.mean(y, axis=(0, 2, 3), keepdims=True)     # BN (train mode)
        var = jnp.mean((y - mean) ** 2, axis=(0, 2, 3), keepdims=True)
        y = (y - mean) * jax.lax.rsqrt(var + eps)
        y = y * gamma[None, :, None, None] + beta[None, :, None, None]
        nb, c, hh, ww = y.shape                               # MaxPool 2x2
        return y.reshape(nb, c, hh // 2, 2, ww // 2, 2).max(axis=(3, 5))

    x = x_nchw.astype(jnp.float32)
    y = conv_block(x, raw["w_conv1"], raw["b_conv1"], raw["alpha"][0],
                   raw["gamma1"], raw["beta1"])
    y = conv_block(y, raw["w_conv2"], raw["b_conv2"], raw["alpha"][1],
                   raw["gamma2"], raw["beta2"])
    f = y.reshape(y.shape[0], -1)                             # NCHW flatten
    h1 = jnp.dot(f, raw["w_fc1"].T, precision=hp) + raw["b_fc1"]
    h1 = jnp.where(h1 >= 0.0, h1, raw["alpha"][2] * h1)
    h2 = jnp.dot(h1, raw["w_fc2"].T, precision=hp) + raw["b_fc2"]
    h2 = jnp.where(h2 >= 0.0, h2, raw["alpha"][3] * h2)
    h3 = jnp.dot(h2, raw["w_fc3"].T, precision=hp) + raw["b_fc3"]
    return h3 / jnp.sqrt(jnp.sum(h3 * h3, axis=1, keepdims=True))


if __name__ == "__main__":
    key = jax.random.PRNGKey(0)
    k_param, k_x = jax.random.split(key)
    params = init_params(k_param, img_size=(16, 16), out_channels=32)
    x = jax.random.normal(k_x, (2, 3, 16, 16), jnp.float32)

    fwd = jax.jit(functools.partial(embedding_net_l2, params))
    out = jax.block_until_ready(fwd(x))
    assert out.shape == (2, 32), out.shape

    # Embeddings must be L2-normalized.
    norms = jnp.linalg.norm(out, axis=1)
    assert bool(jnp.allclose(norms, 1.0, atol=1e-3)), norms

    # Validate against a pure-JAX (HIGHEST-precision) reference of the PyTorch
    # forward.  Tolerance tightened 4x vs. the previous version; kept a small
    # margin for MXU f32 accumulation-order differences.
    ref = jax.block_until_ready(
        jax.jit(functools.partial(reference_forward, params["raw"]))(x))
    max_err = float(jnp.max(jnp.abs(out - ref)))
    assert max_err < 5e-3, max_err

    print("KERNEL_OK")
</pallas_src>

<mosaic_0001>
module attributes {stable_mosaic.version = 11 : i64} {
  func.func @kernel(%arg0: i32, %arg1: memref<32x240xf32, #tpu.memory_space<vmem>>, %arg2: memref<240x128xf32, #tpu.memory_space<vmem>>, %arg3: memref<320x128xf32, #tpu.memory_space<vmem>>, %arg4: memref<256x128xf32, #tpu.memory_space<vmem>>, %arg5: memref<128x128xf32, #tpu.memory_space<vmem>>, %arg6: memref<128x32xf32, #tpu.memory_space<vmem>>, %arg7: memref<13x128xf32, #tpu.memory_space<vmem>>, %arg8: memref<2x32xf32, #tpu.memory_space<vmem>>, %arg9: memref<32x128xf32, #tpu.memory_space<vmem>>, %arg10: memref<16x320xf32, #tpu.memory_space<vmem>>, %arg11: memref<16x128xf32, #tpu.memory_space<vmem>>, %arg12: memref<2x256xf32, #tpu.memory_space<vmem>>) attributes {dimension_semantics = [#tpu.dimension_semantics<arbitrary>], iteration_bounds = array<i64: 1>, scalar_prefetch = 0 : i64, scratch_operands = 4 : i64, tpu.core_type = #tpu.core_type<tc>, window_params = [{pipeline_mode = #tpu.pipeline_mode<synchronous>, transform_indices = @transform_0, window_bounds = array<i64: 32, 240>}, {pipeline_mode = #tpu.pipeline_mode<synchronous>, transform_indices = @transform_1, window_bounds = array<i64: 240, 128>}, {pipeline_mode = #tpu.pipeline_mode<synchronous>, transform_indices = @transform_2, window_bounds = array<i64: 320, 128>}, {pipeline_mode = #tpu.pipeline_mode<synchronous>, transform_indices = @transform_3, window_bounds = array<i64: 256, 128>}, {pipeline_mode = #tpu.pipeline_mode<synchronous>, transform_indices = @transform_4, window_bounds = array<i64: 128, 128>}, {pipeline_mode = #tpu.pipeline_mode<synchronous>, transform_indices = @transform_5, window_bounds = array<i64: 128, 32>}, {pipeline_mode = #tpu.pipeline_mode<synchronous>, transform_indices = @transform_6, window_bounds = array<i64: 13, 128>}, {pipeline_mode = #tpu.pipeline_mode<synchronous>, transform_indices = @transform_7, window_bounds = array<i64: 2, 32>}]} {
    %c0 = arith.constant 0 : index
    %c0_0 = arith.constant 0 : index
    %0 = vector.load %arg1[%c0, %c0_0] : memref<32x240xf32, #tpu.memory_space<vmem>>, vector<32x240xf32>
    %c0_1 = arith.constant 0 : index
    %c0_2 = arith.constant 0 : index
    %1 = vector.load %arg2[%c0_1, %c0_2] : memref<240x128xf32, #tpu.memory_space<vmem>>, vector<240x128xf32>
    %cst = arith.constant dense<0.000000e+00> : vector<32x128xf32>
    %2 = tpu.matmul %0, %1, %cst {dimension_numbers = #tpu.dot_dimension_numbers<[1], [0], [0], [1], [0, 0, 1, 1], [], []>} : vector<32x240xf32>, vector<240x128xf32>, vector<32x128xf32> -> vector<32x128xf32>
    %c0_3 = arith.constant 0 : index
    %c0_4 = arith.constant 0 : index
    %3 = vector.load %arg7[%c0_3, %c0_4] : memref<13x128xf32, #tpu.memory_space<vmem>>, vector<1x128xf32>
    %4 = vector.broadcast %3 : vector<1x128xf32> to vector<32x128xf32>
    %5 = arith.addf %2, %4 : vector<32x128xf32>
    %cst_5 = arith.constant 0.000000e+00 : f32
    %6 = vector.broadcast %cst_5 : f32 to vector<32x128xf32>
    %7 = arith.cmpf oge, %5, %6 : vector<32x128xf32>
    %c9 = arith.constant 9 : index
    %c0_6 = arith.constant 0 : index
    %8 = vector.load %arg7[%c9, %c0_6] : memref<13x128xf32, #tpu.memory_space<vmem>>, vector<1x128xf32>
    %9 = vector.broadcast %8 : vector<1x128xf32> to vector<32x128xf32>
    %10 = arith.mulf %9, %5 : vector<32x128xf32>
    %11 = arith.select %7, %5, %10 : vector<32x128xi1>, vector<32x128xf32>
    %c1 = arith.constant 1 : index
    %c0_7 = arith.constant 0 : index
    %12 = vector.load %arg7[%c1, %c0_7] : memref<13x128xf32, #tpu.memory_space<vmem>>, vector<1x128xf32>
    %c2 = arith.constant 2 : index
    %c0_8 = arith.constant 0 : index
    %13 = vector.load %arg7[%c2, %c0_8] : memref<13x128xf32, #tpu.memory_space<vmem>>, vector<1x128xf32>
    %cst_9 = arith.constant dense<0.000000e+00> : vector<128xf32>
    %14 = vector.multi_reduction <add>, %11, %cst_9 [0] : vector<32x128xf32> to vector<128xf32>
    %15 = vector.shape_cast %14 : vector<128xf32> to vector<1x128xf32>
    %c8_i32 = arith.constant 8 : i32
    %16 = tpu.dynamic_rotate %15 by %c8_i32 dim 1 : vector<1x128xf32>, i32 -> vector<1x128xf32>
    %17 = arith.addf %15, %16 : vector<1x128xf32>
    %c16_i32 = arith.constant 16 : i32
    %18 = tpu.dynamic_rotate %17 by %c16_i32 dim 1 : vector<1x128xf32>, i32 -> vector<1x128xf32>
    %19 = arith.addf %17, %18 : vector<1x128xf32>
    %c32_i32 = arith.constant 32 : i32
    %20 = tpu.dynamic_rotate %19 by %c32_i32 dim 1 : vector<1x128xf32>, i32 -> vector<1x128xf32>
    %21 = arith.addf %19, %20 : vector<1x128xf32>
    %c64_i32 = arith.constant 64 : i32
    %22 = tpu.dynamic_rotate %21 by %c64_i32 dim 1 : vector<1x128xf32>, i32 -> vector<1x128xf32>
    %23 = arith.addf %21, %22 : vector<1x128xf32>
    %cst_10 = arith.constant 0.001953125 : f32
    %24 = vector.broadcast %cst_10 : f32 to vector<1x128xf32>
    %25 = arith.mulf %23, %24 : vector<1x128xf32>
    %26 = vector.broadcast %25 : vector<1x128xf32> to vector<32x128xf32>
    %27 = arith.subf %11, %26 : vector<32x128xf32>
    %28 = arith.mulf %27, %27 : vector<32x128xf32>
    %cst_11 = arith.constant dense<0.000000e+00> : vector<128xf32>
    %29 = vector.multi_reduction <add>, %28, %cst_11 [0] : vector<32x128xf32> to vector<128xf32>
    %30 = vector.shape_cast %29 : vector<128xf32> to vector<1x128xf32>
    %c8_i32_12 = arith.constant 8 : i32
    %31 = tpu.dynamic_rotate %30 by %c8_i32_12 dim 1 : vector<1x128xf32>, i32 -> vector<1x128xf32>
    %32 = arith.addf %30, %31 : vector<1x128xf32>
    %c16_i32_13 = arith.constant 16 : i32
    %33 = tpu.dynamic_rotate %32 by %c16_i32_13 dim 1 : vector<1x128xf32>, i32 -> vector<1x128xf32>
    %34 = arith.addf %32, %33 : vector<1x128xf32>
    %c32_i32_14 = arith.constant 32 : i32
    %35 = tpu.dynamic_rotate %34 by %c32_i32_14 dim 1 : vector<1x128xf32>, i32 -> vector<1x128xf32>
    %36 = arith.addf %34, %35 : vector<1x128xf32>
    %c64_i32_15 = arith.constant 64 : i32
    %37 = tpu.dynamic_rotate %36 by %c64_i32_15 dim 1 : vector<1x128xf32>, i32 -> vector<1x128xf32>
    %38 = arith.addf %36, %37 : vector<1x128xf32>
    %cst_16 = arith.constant 0.001953125 : f32
    %39 = vector.broadcast %cst_16 : f32 to vector<1x128xf32>
    %40 = arith.mulf %38, %39 : vector<1x128xf32>
    %cst_17 = arith.constant 9.99999974E-6 : f32
    %41 = vector.broadcast %cst_17 : f32 to vector<1x128xf32>
    %42 = arith.addf %40, %41 : vector<1x128xf32>
    %43 = math.rsqrt %42 : vector<1x128xf32>
    %44 = vector.broadcast %43 : vector<1x128xf32> to vector<32x128xf32>
    %45 = arith.mulf %27, %44 : vector<32x128xf32>
    %46 = vector.broadcast %12 : vector<1x128xf32> to vector<32x128xf32>
    %47 = arith.mulf %45, %46 : vector<32x128xf32>
    %48 = vector.broadcast %13 : vector<1x128xf32> to vector<32x128xf32>
    %49 = arith.addf %47, %48 : vector<32x128xf32>
    %c0_18 = arith.constant 0 : index
    %c0_19 = arith.constant 0 : index
    %50 = vector.load %arg9[%c0_18, %c0_19] : memref<32x128xf32, #tpu.memory_space<vmem>>, vector<32x128xf32>
    tpu.vector_store %arg9[%c0_18, %c0_19], %49 {strides = array<i32>} : memref<32x128xf32, #tpu.memory_space<vmem>>, vector<32x128xf32>,
    %cst_20 = arith.constant 0.000000e+00 : f32
    %51 = vector.broadcast %cst_20 : f32 to vector<16x320xf32>
    %c0_21 = arith.constant 0 : index
    %c0_22 = arith.constant 0 : index
    %52 = vector.load %arg10[%c0_21, %c0_22] : memref<16x320xf32, #tpu.memory_space<vmem>>, vector<16x320xf32>
    tpu.vector_store %arg10[%c0_21, %c0_22], %51 {strides = array<i32>} : memref<16x320xf32, #tpu.memory_space<vmem>>, vector<16x320xf32>,
    %c0_23 = arith.constant 0 : index
    %c0_24 = arith.constant 0 : index
    %53 = tpu.strided_load %arg9[%c0_23, %c0_24] {strides = array<i32: 2, 1>} : memref<32x128xf32, #tpu.memory_space<vmem>>, vector<8x128xf32>
    %c1_25 = arith.constant 1 : index
    %c0_26 = arith.constant 0 : index
    %54 = tpu.strided_load %arg9[%c1_25, %c0_26] {strides = array<i32: 2, 1>} : memref<32x128xf32, #tpu.memory_space<vmem>>, vector<8x128xf32>
    %55 = arith.maximumf %53, %54 : vector<8x128xf32>
    %56 = vector.extract_strided_slice %55 {offsets = [0, 0], sizes = [8, 64], strides = [1, 1]} : vector<8x128xf32> to vector<8x64xf32>
    %57 = vector.extract_strided_slice %55 {offsets = [0, 64], sizes = [8, 64], strides = [1, 1]} : vector<8x128xf32> to vector<8x64xf32>
    %58 = arith.maximumf %56, %57 : vector<8x64xf32>
    %59 = vector.extract_strided_slice %58 {offsets = [0, 0], sizes = [6, 64], strides = [1, 1]} : vector<8x64xf32> to vector<6x64xf32>
    %c2_27 = arith.constant 2 : index
    %c0_28 = arith.constant 0 : index
    %60 = vector.load %arg10[%c2_27, %c0_28] : memref<16x320xf32, #tpu.memory_space<vmem>>, vector<6x64xf32>
    tpu.vector_store %arg10[%c2_27, %c0_28], %59 {strides = array<i32>} : memref<16x320xf32, #tpu.memory_space<vmem>>, vector<6x64xf32>,
    %61 = vector.extract_strided_slice %58 {offsets = [0, 0], sizes = [7, 64], strides = [1, 1]} : vector<8x64xf32> to vector<7x64xf32>
    %c1_29 = arith.constant 1 : index
    %c64 = arith.constant 64 : index
    %62 = vector.load %arg10[%c1_29, %c64] : memref<16x320xf32, #tpu.memory_space<vmem>>, vector<7x64xf32>
    tpu.vector_store %arg10[%c1_29, %c64], %61 {strides = array<i32>} : memref<16x320xf32, #tpu.memory_space<vmem>>, vector<7x64xf32>,
    %c0_30 = arith.constant 0 : index
    %c128 = arith.constant 128 : index
    %63 = vector.load %arg10[%c0_30, %c128] : memref<16x320xf32, #tpu.memory_space<vmem>>, vector<8x64xf32>
    tpu.vector_store %arg10[%c0_30, %c128], %58 {strides = array<i32>} : memref<16x320xf32, #tpu.memory_space<vmem>>, vector<8x64xf32>,
    %64 = vector.extract_strided_slice %58 {offsets = [1, 0], sizes = [7, 64], strides = [1, 1]} : vector<8x64xf32> to vector<7x64xf32>
    %c0_31 = arith.constant 0 : index
    %c192 = arith.constant 192 : index
    %65 = vector.load %arg10[%c0_31, %c192] : memref<16x320xf32, #tpu.memory_space<vmem>>, vector<7x64xf32>
    tpu.vector_store %arg10[%c0_31, %c192], %64 {strides = array<i32>} : memref<16x320xf32, #tpu.memory_space<vmem>>, vector<7x64xf32>,
    %66 = vector.extract_strided_slice %58 {offsets = [2, 0], sizes = [6, 64], strides = [1, 1]} : vector<8x64xf32> to vector<6x64xf32>
    %c0_32 = arith.constant 0 : index
    %c256 = arith.constant 256 : index
    %67 = vector.load %arg10[%c0_32, %c256] : memref<16x320xf32, #tpu.memory_space<vmem>>, vector<6x64xf32>
    tpu.vector_store %arg10[%c0_32, %c256], %66 {strides = array<i32>} : memref<16x320xf32, #tpu.memory_space<vmem>>, vector<6x64xf32>,
    %c16 = arith.constant 16 : index
    %c0_33 = arith.constant 0 : index
    %68 = tpu.strided_load %arg9[%c16, %c0_33] {strides = array<i32: 2, 1>} : memref<32x128xf32, #tpu.memory_space<vmem>>, vector<8x128xf32>
    %c17 = arith.constant 17 : index
    %c0_34 = arith.constant 0 : index
    %69 = tpu.strided_load %arg9[%c17, %c0_34] {strides = array<i32: 2, 1>} : memref<32x128xf32, #tpu.memory_space<vmem>>, vector<8x128xf32>
    %70 = arith.maximumf %68, %69 : vector<8x128xf32>
    %71 = vector.extract_strided_slice %70 {offsets = [0, 0], sizes = [8, 64], strides = [1, 1]} : vector<8x128xf32> to vector<8x64xf32>
    %72 = vector.extract_strided_slice %70 {offsets = [0, 64], sizes = [8, 64], strides = [1, 1]} : vector<8x128xf32> to vector<8x64xf32>
    %73 = arith.maximumf %71, %72 : vector<8x64xf32>
    %74 = vector.extract_strided_slice %73 {offsets = [0, 0], sizes = [6, 64], strides = [1, 1]} : vector<8x64xf32> to vector<6x64xf32>
    %c10 = arith.constant 10 : index
    %c0_35 = arith.constant 0 : index
    %75 = vector.load %arg10[%c10, %c0_35] : memref<16x320xf32, #tpu.memory_space<vmem>>, vector<6x64xf32>
    tpu.vector_store %arg10[%c10, %c0_35], %74 {strides = array<i32>} : memref<16x320xf32, #tpu.memory_space<vmem>>, vector<6x64xf32>,
    %76 = vector.extract_strided_slice %73 {offsets = [0, 0], sizes = [7, 64], strides = [1, 1]} : vector<8x64xf32> to vector<7x64xf32>
    %c9_36 = arith.constant 9 : index
    %c64_37 = arith.constant 64 : index
    %77 = vector.load %arg10[%c9_36, %c64_37] : memref<16x320xf32, #tpu.memory_space<vmem>>, vector<7x64xf32>
    tpu.vector_store %arg10[%c9_36, %c64_37], %76 {strides = array<i32>} : memref<16x320xf32, #tpu.memory_space<vmem>>, vector<7x64xf32>,
    %c8 = arith.constant 8 : index
    %c128_38 = arith.constant 128 : index
    %78 = vector.load %arg10[%c8, %c128_38] : memref<16x320xf32, #tpu.memory_space<vmem>>, vector<8x64xf32>
    tpu.vector_store %arg10[%c8, %c128_38], %73 {strides = array<i32>} : memref<16x320xf32, #tpu.memory_space<vmem>>, vector<8x64xf32>,
    %79 = vector.extract_strided_slice %73 {offsets = [1, 0], sizes = [7, 64], strides = [1, 1]} : vector<8x64xf32> to vector<7x64xf32>
    %c8_39 = arith.constant 8 : index
    %c192_40 = arith.constant 192 : index
    %80 = vector.load %arg10[%c8_39, %c192_40] : memref<16x320xf32, #tpu.memory_space<vmem>>, vector<7x64xf32>
    tpu.vector_store %arg10[%c8_39, %c192_40], %79 {strides = array<i32>} : memref<16x320xf32, #tpu.memory_space<vmem>>, vector<7x64xf32>,
    %81 = vector.extract_strided_slice %73 {offsets = [2, 0], sizes = [6, 64], strides = [1, 1]} : vector<8x64xf32> to vector<6x64xf32>
    %c8_41 = arith.constant 8 : index
    %c256_42 = arith.constant 256 : index
    %82 = vector.load %arg10[%c8_41, %c256_42] : memref<16x320xf32, #tpu.memory_space<vmem>>, vector<6x64xf32>
    tpu.vector_store %arg10[%c8_41, %c256_42], %81 {strides = array<i32>} : memref<16x320xf32, #tpu.memory_space<vmem>>, vector<6x64xf32>,
    %c0_43 = arith.constant 0 : index
    %c0_44 = arith.constant 0 : index
    %83 = vector.load %arg10[%c0_43, %c0_44] : memref<16x320xf32, #tpu.memory_space<vmem>>, vector<16x320xf32>
    %c0_45 = arith.constant 0 : index
    %c0_46 = arith.constant 0 : index
    %84 = vector.load %arg3[%c0_45, %c0_46] : memref<320x128xf32, #tpu.memory_space<vmem>>, vector<320x128xf32>
    %cst_47 = arith.constant dense<0.000000e+00> : vector<16x128xf32>
    %85 = tpu.matmul %83, %84, %cst_47 {dimension_numbers = #tpu.dot_dimension_numbers<[1], [0], [0], [1], [0, 0, 1, 1], [], []>} : vector<16x320xf32>, vector<320x128xf32>, vector<16x128xf32> -> vector<16x128xf32>
    %c3 = arith.constant 3 : index
    %c0_48 = arith.constant 0 : index
    %86 = vector.load %arg7[%c3, %c0_48] : memref<13x128xf32, #tpu.memory_space<vmem>>, vector<1x128xf32>
    %87 = vector.broadcast %86 : vector<1x128xf32> to vector<16x128xf32>
    %88 = arith.addf %85, %87 : vector<16x128xf32>
    %cst_49 = arith.constant 0.000000e+00 : f32
    %89 = vector.broadcast %cst_49 : f32 to vector<16x128xf32>
    %90 = arith.cmpf oge, %88, %89 : vector<16x128xf32>
    %c10_50 = arith.constant 10 : index
    %c0_51 = arith.constant 0 : index
    %91 = vector.load %arg7[%c10_50, %c0_51] : memref<13x128xf32, #tpu.memory_space<vmem>>, vector<1x128xf32>
    %92 = vector.broadcast %91 : vector<1x128xf32> to vector<16x128xf32>
    %93 = arith.mulf %92, %88 : vector<16x128xf32>
    %94 = arith.select %90, %88, %93 : vector<16x128xi1>, vector<16x128xf32>
    %c4 = arith.constant 4 : index
    %c0_52 = arith.constant 0 : index
    %95 = vector.load %arg7[%c4, %c0_52] : memref<13x128xf32, #tpu.memory_space<vmem>>, vector<1x128xf32>
    %c5 = arith.constant 5 : index
    %c0_53 = arith.constant 0 : index
    %96 = vector.load %arg7[%c5, %c0_53] : memref<13x128xf32, #tpu.memory_space<vmem>>, vector<1x128xf32>
    %cst_54 = arith.constant dense<0.000000e+00> : vector<128xf32>
    %97 = vector.multi_reduction <add>, %94, %cst_54 [0] : vector<16x128xf32> to vector<128xf32>
    %98 = vector.shape_cast %97 : vector<128xf32> to vector<1x128xf32>
    %c16_i32_55 = arith.constant 16 : i32
    %99 = tpu.dynamic_rotate %98 by %c16_i32_55 dim 1 : vector<1x128xf32>, i32 -> vector<1x128xf32>
    %100 = arith.addf %98, %99 : vector<1x128xf32>
    %c32_i32_56 = arith.constant 32 : i32
    %101 = tpu.dynamic_rotate %100 by %c32_i32_56 dim 1 : vector<1x128xf32>, i32 -> vector<1x128xf32>
    %102 = arith.addf %100, %101 : vector<1x128xf32>
    %c64_i32_57 = arith.constant 64 : i32
    %103 = tpu.dynamic_rotate %102 by %c64_i32_57 dim 1 : vector<1x128xf32>, i32 -> vector<1x128xf32>
    %104 = arith.addf %102, %103 : vector<1x128xf32>
    %cst_58 = arith.constant 7.812500e-03 : f32
    %105 = vector.broadcast %cst_58 : f32 to vector<1x128xf32>
    %106 = arith.mulf %104, %105 : vector<1x128xf32>
    %107 = vector.broadcast %106 : vector<1x128xf32> to vector<16x128xf32>
    %108 = arith.subf %94, %107 : vector<16x128xf32>
    %109 = arith.mulf %108, %108 : vector<16x128xf32>
    %cst_59 = arith.constant dense<0.000000e+00> : vector<128xf32>
    %110 = vector.multi_reduction <add>, %109, %cst_59 [0] : vector<16x128xf32> to vector<128xf32>
    %111 = vector.shape_cast %110 : vector<128xf32> to vector<1x128xf32>
    %c16_i32_60 = arith.constant 16 : i32
    %112 = tpu.dynamic_rotate %111 by %c16_i32_60 dim 1 : vector<1x128xf32>, i32 -> vector<1x128xf32>
    %113 = arith.addf %111, %112 : vector<1x128xf32>
    %c32_i32_61 = arith.constant 32 : i32
    %114 = tpu.dynamic_rotate %113 by %c32_i32_61 dim 1 : vector<1x128xf32>, i32 -> vector<1x128xf32>
    %115 = arith.addf %113, %114 : vector<1x128xf32>
    %c64_i32_62 = arith.constant 64 : i32
    %116 = tpu.dynamic_rotate %115 by %c64_i32_62 dim 1 : vector<1x128xf32>, i32 -> vector<1x128xf32>
    %117 = arith.addf %115, %116 : vector<1x128xf32>
    %cst_63 = arith.constant 7.812500e-03 : f32
    %118 = vector.broadcast %cst_63 : f32 to vector<1x128xf32>
    %119 = arith.mulf %117, %118 : vector<1x128xf32>
    %cst_64 = arith.constant 9.99999974E-6 : f32
    %120 = vector.broadcast %cst_64 : f32 to vector<1x128xf32>
    %121 = arith.addf %119, %120 : vector<1x128xf32>
    %122 = math.rsqrt %121 : vector<1x128xf32>
    %123 = vector.broadcast %122 : vector<1x128xf32> to vector<16x128xf32>
    %124 = arith.mulf %108, %123 : vector<16x128xf32>
    %125 = vector.broadcast %95 : vector<1x128xf32> to vector<16x128xf32>
    %126 = arith.mulf %124, %125 : vector<16x128xf32>
    %127 = vector.broadcast %96 : vector<1x128xf32> to vector<16x128xf32>
    %128 = arith.addf %126, %127 : vector<16x128xf32>
    %c0_65 = arith.constant 0 : index
    %c0_66 = arith.constant 0 : index
    %129 = vector.load %arg11[%c0_65, %c0_66] : memref<16x128xf32, #tpu.memory_space<vmem>>, vector<16x128xf32>
    tpu.vector_store %arg11[%c0_65, %c0_66], %128 {strides = array<i32>} : memref<16x128xf32, #tpu.memory_space<vmem>>, vector<16x128xf32>,
    %c0_67 = arith.constant 0 : index
    %c0_68 = arith.constant 0 : index
    %130 = tpu.strided_load %arg11[%c0_67, %c0_68] {strides = array<i32: 2, 1>} : memref<16x128xf32, #tpu.memory_space<vmem>>, vector<4x128xf32>
    %c1_69 = arith.constant 1 : index
    %c0_70 = arith.constant 0 : index
    %131 = tpu.strided_load %arg11[%c1_69, %c0_70] {strides = array<i32: 2, 1>} : memref<16x128xf32, #tpu.memory_space<vmem>>, vector<4x128xf32>
    %132 = arith.maximumf %130, %131 : vector<4x128xf32>
    %133 = vector.extract_strided_slice %132 {offsets = [0, 0], sizes = [4, 64], strides = [1, 1]} : vector<4x128xf32> to vector<4x64xf32>
    %134 = vector.extract_strided_slice %132 {offsets = [0, 64], sizes = [4, 64], strides = [1, 1]} : vector<4x128xf32> to vector<4x64xf32>
    %135 = arith.maximumf %133, %134 : vector<4x64xf32>
    %136 = vector.extract_strided_slice %135 {offsets = [0, 0], sizes = [1, 64], strides = [1, 1]} : vector<4x64xf32> to vector<1x64xf32>
    %c0_71 = arith.constant 0 : index
    %c0_72 = arith.constant 0 : index
    %137 = vector.load %arg12[%c0_71, %c0_72] : memref<2x256xf32, #tpu.memory_space<vmem>>, vector<1x64xf32>
    tpu.vector_store %arg12[%c0_71, %c0_72], %136 {strides = array<i32>} : memref<2x256xf32, #tpu.memory_space<vmem>>, vector<1x64xf32>,
    %138 = vector.extract_strided_slice %135 {offsets = [1, 0], sizes = [1, 64], strides = [1, 1]} : vector<4x64xf32> to vector<1x64xf32>
    %c0_73 = arith.constant 0 : index
    %c64_74 = arith.constant 64 : index
    %139 = vector.load %arg12[%c0_73, %c64_74] : memref<2x256xf32, #tpu.memory_space<vmem>>, vector<1x64xf32>
    tpu.vector_store %arg12[%c0_73, %c64_74], %138 {strides = array<i32>} : memref<2x256xf32, #tpu.memory_space<vmem>>, vector<1x64xf32>,
    %140 = vector.extract_strided_slice %135 {offsets = [2, 0], sizes = [1, 64], strides = [1, 1]} : vector<4x64xf32> to vector<1x64xf32>
    %c0_75 = arith.constant 0 : index
    %c128_76 = arith.constant 128 : index
    %141 = vector.load %arg12[%c0_75, %c128_76] : memref<2x256xf32, #tpu.memory_space<vmem>>, vector<1x64xf32>
    tpu.vector_store %arg12[%c0_75, %c128_76], %140 {strides = array<i32>} : memref<2x256xf32, #tpu.memory_space<vmem>>, vector<1x64xf32>,
    %142 = vector.extract_strided_slice %135 {offsets = [3, 0], sizes = [1, 64], strides = [1, 1]} : vector<4x64xf32> to vector<1x64xf32>
    %c0_77 = arith.constant 0 : index
    %c192_78 = arith.constant 192 : index
    %143 = vector.load %arg12[%c0_77, %c192_78] : memref<2x256xf32, #tpu.memory_space<vmem>>, vector<1x64xf32>
    tpu.vector_store %arg12[%c0_77, %c192_78], %142 {strides = array<i32>} : memref<2x256xf32, #tpu.memory_space<vmem>>, vector<1x64xf32>,
    %c8_79 = arith.constant 8 : index
    %c0_80 = arith.constant 0 : index
    %144 = tpu.strided_load %arg11[%c8_79, %c0_80] {strides = array<i32: 2, 1>} : memref<16x128xf32, #tpu.memory_space<vmem>>, vector<4x128xf32>
    %c9_81 = arith.constant 9 : index
    %c0_82 = arith.constant 0 : index
    %145 = tpu.strided_load %arg11[%c9_81, %c0_82] {strides = array<i32: 2, 1>} : memref<16x128xf32, #tpu.memory_space<vmem>>, vector<4x128xf32>
    %146 = arith.maximumf %144, %145 : vector<4x128xf32>
    %147 = vector.extract_strided_slice %146 {offsets = [0, 0], sizes = [4, 64], strides = [1, 1]} : vector<4x128xf32> to vector<4x64xf32>
    %148 = vector.extract_strided_slice %146 {offsets = [0, 64], sizes = [4, 64], strides = [1, 1]} : vector<4x128xf32> to vector<4x64xf32>
    %149 = arith.maximumf %147, %148 : vector<4x64xf32>
    %150 = vector.extract_strided_slice %149 {offsets = [0, 0], sizes = [1, 64], strides = [1, 1]} : vector<4x64xf32> to vector<1x64xf32>
    %c1_83 = arith.constant 1 : index
    %c0_84 = arith.constant 0 : index
    %151 = vector.load %arg12[%c1_83, %c0_84] : memref<2x256xf32, #tpu.memory_space<vmem>>, vector<1x64xf32>
    tpu.vector_store %arg12[%c1_83, %c0_84], %150 {strides = array<i32>} : memref<2x256xf32, #tpu.memory_space<vmem>>, vector<1x64xf32>,
    %152 = vector.extract_strided_slice %149 {offsets = [1, 0], sizes = [1, 64], strides = [1, 1]} : vector<4x64xf32> to vector<1x64xf32>
    %c1_85 = arith.constant 1 : index
    %c64_86 = arith.constant 64 : index
    %153 = vector.load %arg12[%c1_85, %c64_86] : memref<2x256xf32, #tpu.memory_space<vmem>>, vector<1x64xf32>
    tpu.vector_store %arg12[%c1_85, %c64_86], %152 {strides = array<i32>} : memref<2x256xf32, #tpu.memory_space<vmem>>, vector<1x64xf32>,
    %154 = vector.extract_strided_slice %149 {offsets = [2, 0], sizes = [1, 64], strides = [1, 1]} : vector<4x64xf32> to vector<1x64xf32>
    %c1_87 = arith.constant 1 : index
    %c128_88 = arith.constant 128 : index
    %155 = vector.load %arg12[%c1_87, %c128_88] : memref<2x256xf32, #tpu.memory_space<vmem>>, vector<1x64xf32>
    tpu.vector_store %arg12[%c1_87, %c128_88], %154 {strides = array<i32>} : memref<2x256xf32, #tpu.memory_space<vmem>>, vector<1x64xf32>,
    %156 = vector.extract_strided_slice %149 {offsets = [3, 0], sizes = [1, 64], strides = [1, 1]} : vector<4x64xf32> to vector<1x64xf32>
    %c1_89 = arith.constant 1 : index
    %c192_90 = arith.constant 192 : index
    %157 = vector.load %arg12[%c1_89, %c192_90] : memref<2x256xf32, #tpu.memory_space<vmem>>, vector<1x64xf32>
    tpu.vector_store %arg12[%c1_89, %c192_90], %156 {strides = array<i32>} : memref<2x256xf32, #tpu.memory_space<vmem>>, vector<1x64xf32>,
    %c0_91 = arith.constant 0 : index
    %c0_92 = arith.constant 0 : index
    %158 = vector.load %arg12[%c0_91, %c0_92] : memref<2x256xf32, #tpu.memory_space<vmem>>, vector<2x256xf32>
    %c0_93 = arith.constant 0 : index
    %c0_94 = arith.constant 0 : index
    %159 = vector.load %arg4[%c0_93, %c0_94] : memref<256x128xf32, #tpu.memory_space<vmem>>, vector<256x128xf32>
    %cst_95 = arith.constant dense<0.000000e+00> : vector<2x128xf32>
    %160 = tpu.matmul %158, %159, %cst_95 {dimension_numbers = #tpu.dot_dimension_numbers<[1], [0], [0], [1], [0, 0, 1, 1], [], []>} : vector<2x256xf32>, vector<256x128xf32>, vector<2x128xf32> -> vector<2x128xf32>
    %c6 = arith.constant 6 : index
    %c0_96 = arith.constant 0 : index
    %161 = vector.load %arg7[%c6, %c0_96] : memref<13x128xf32, #tpu.memory_space<vmem>>, vector<1x128xf32>
    %162 = vector.broadcast %161 : vector<1x128xf32> to vector<2x128xf32>
    %163 = arith.addf %160, %162 : vector<2x128xf32>
    %cst_97 = arith.constant 0.000000e+00 : f32
    %164 = vector.broadcast %cst_97 : f32 to vector<2x128xf32>
    %165 = arith.cmpf oge, %163, %164 : vector<2x128xf32>
    %c11 = arith.constant 11 : index
    %c0_98 = arith.constant 0 : index
    %166 = vector.load %arg7[%c11, %c0_98] : memref<13x128xf32, #tpu.memory_space<vmem>>, vector<1x128xf32>
    %167 = vector.broadcast %166 : vector<1x128xf32> to vector<2x128xf32>
    %168 = arith.mulf %167, %163 : vector<2x128xf32>
    %169 = arith.select %165, %163, %168 : vector<2x128xi1>, vector<2x128xf32>
    %c0_99 = arith.constant 0 : index
    %c0_100 = arith.constant 0 : index
    %170 = vector.load %arg5[%c0_99, %c0_100] : memref<128x128xf32, #tpu.memory_space<vmem>>, vector<128x128xf32>
    %cst_101 = arith.constant dense<0.000000e+00> : vector<2x128xf32>
    %171 = tpu.matmul %169, %170, %cst_101 {dimension_numbers = #tpu.dot_dimension_numbers<[1], [0], [0], [1], [0, 0, 1, 1], [], []>} : vector<2x128xf32>, vector<128x128xf32>, vector<2x128xf32> -> vector<2x128xf32>
    %c7 = arith.constant 7 : index
    %c0_102 = arith.constant 0 : index
    %172 = vector.load %arg7[%c7, %c0_102] : memref<13x128xf32, #tpu.memory_space<vmem>>, vector<1x128xf32>
    %173 = vector.broadcast %172 : vector<1x128xf32> to vector<2x128xf32>
    %174 = arith.addf %171, %173 : vector<2x128xf32>
    %cst_103 = arith.constant 0.000000e+00 : f32
    %175 = vector.broadcast %cst_103 : f32 to vector<2x128xf32>
    %176 = arith.cmpf oge, %174, %175 : vector<2x128xf32>
    %c12 = arith.constant 12 : index
    %c0_104 = arith.constant 0 : index
    %177 = vector.load %arg7[%c12, %c0_104] : memref<13x128xf32, #tpu.memory_space<vmem>>, vector<1x128xf32>
    %178 = vector.broadcast %177 : vector<1x128xf32> to vector<2x128xf32>
    %179 = arith.mulf %178, %174 : vector<2x128xf32>
    %180 = arith.select %176, %174, %179 : vector<2x128xi1>, vector<2x128xf32>
    %c0_105 = arith.constant 0 : index
    %c0_106 = arith.constant 0 : index
    %181 = vector.load %arg6[%c0_105, %c0_106] : memref<128x32xf32, #tpu.memory_space<vmem>>, vector<128x32xf32>
    %cst_107 = arith.constant dense<0.000000e+00> : vector<2x32xf32>
    %182 = tpu.matmul %180, %181, %cst_107 {dimension_numbers = #tpu.dot_dimension_numbers<[1], [0], [0], [1], [0, 0, 1, 1], [], []>} : vector<2x128xf32>, vector<128x32xf32>, vector<2x32xf32> -> vector<2x32xf32>
    %c8_108 = arith.constant 8 : index
    %c0_109 = arith.constant 0 : index
    %183 = vector.load %arg7[%c8_108, %c0_109] : memref<13x128xf32, #tpu.memory_space<vmem>>, vector<1x32xf32>
    %184 = vector.broadcast %183 : vector<1x32xf32> to vector<2x32xf32>
    %185 = arith.addf %182, %184 : vector<2x32xf32>
    %186 = arith.mulf %185, %185 : vector<2x32xf32>
    %cst_110 = arith.constant dense<0.000000e+00> : vector<2xf32>
    %187 = vector.multi_reduction <add>, %186, %cst_110 [1] : vector<2x32xf32> to vector<2xf32>
    %188 = vector.shape_cast %187 : vector<2xf32> to vector<2x1xf32>
    %189 = math.rsqrt %188 : vector<2x1xf32>
    %190 = vector.broadcast %189 : vector<2x1xf32> to vector<2x32xf32>
    %191 = arith.mulf %185, %190 : vector<2x32xf32>
    %c0_111 = arith.constant 0 : index
    %c0_112 = arith.constant 0 : index
    %192 = vector.load %arg8[%c0_111, %c0_112] : memref<2x32xf32, #tpu.memory_space<vmem>>, vector<2x32xf32>
    tpu.vector_store %arg8[%c0_111, %c0_112], %191 {strides = array<i32>} : memref<2x32xf32, #tpu.memory_space<vmem>>, vector<2x32xf32>,
    return
  }
  func.func @transform_0(%arg0: i32) -> (i32, i32) {
    %c0_i32 = arith.constant 0 : i32
    %c0_i32_0 = arith.constant 0 : i32
    %c0_i32_1 = arith.constant 0 : i32
    return %c0_i32, %c0_i32_0 : i32, i32
  }
  func.func @transform_1(%arg0: i32) -> (i32, i32) {
    %c0_i32 = arith.constant 0 : i32
    %c0_i32_0 = arith.constant 0 : i32
    %c0_i32_1 = arith.constant 0 : i32
    return %c0_i32, %c0_i32_0 : i32, i32
  }
  func.func @transform_2(%arg0: i32) -> (i32, i32) {
    %c0_i32 = arith.constant 0 : i32
    %c0_i32_0 = arith.constant 0 : i32
    %c0_i32_1 = arith.constant 0 : i32
    return %c0_i32, %c0_i32_0 : i32, i32
  }
  func.func @transform_3(%arg0: i32) -> (i32, i32) {
    %c0_i32 = arith.constant 0 : i32
    %c0_i32_0 = arith.constant 0 : i32
    %c0_i32_1 = arith.constant 0 : i32
    return %c0_i32, %c0_i32_0 : i32, i32
  }
  func.func @transform_4(%arg0: i32) -> (i32, i32) {
    %c0_i32 = arith.constant 0 : i32
    %c0_i32_0 = arith.constant 0 : i32
    %c0_i32_1 = arith.constant 0 : i32
    return %c0_i32, %c0_i32_0 : i32, i32
  }
  func.func @transform_5(%arg0: i32) -> (i32, i32) {
    %c0_i32 = arith.constant 0 : i32
    %c0_i32_0 = arith.constant 0 : i32
    %c0_i32_1 = arith.constant 0 : i32
    return %c0_i32, %c0_i32_0 : i32, i32
  }
  func.func @transform_6(%arg0: i32) -> (i32, i32) {
    %c0_i32 = arith.constant 0 : i32
    %c0_i32_0 = arith.constant 0 : i32
    %c0_i32_1 = arith.constant 0 : i32
    return %c0_i32, %c0_i32_0 : i32, i32
  }
  func.func @transform_7(%arg0: i32) -> (i32, i32) {
    %c0_i32 = arith.constant 0 : i32
    %c0_i32_0 = arith.constant 0 : i32
    %c0_i32_1 = arith.constant 0 : i32
    return %c0_i32, %c0_i32_0 : i32, i32
  }
}

</mosaic_0001>

<bundles_post_ra>
// kernel: embedding_net_l2.1
= control target key start
LH: loop header
LB: loop body
LE: loop exit
PB: predicated region body
PF: predicated region fallthrough
CT: control target
= control target key end

     0   :  { %v1297_v1 = vmov 0.0   ;;  %vm70_vm0 = vcmask 916480   ;;  %s1941_s0 = inlined_call_operand.vmem [shape: f32[32,240], index: 0, kind: input, shape index: {}]   ;;  %s1942_s1 = inlined_call_operand.vmem [shape: f32[240,128], index: 1, kind: input, shape index: {}]   ;;  %s1943_s2 = inlined_call_operand.vmem [shape: f32[320,128], index: 2, kind: input, shape index: {}]   ;;  %s1944_s3 = inlined_call_operand.vmem [shape: f32[256,128], index: 3, kind: input, shape index: {}]   ;;  %s1945_s4 = inlined_call_operand.vmem [shape: f32[128,128], index: 4, kind: input, shape index: {}]   ;;  %s1946_s5 = inlined_call_operand.vmem [shape: f32[128,32], index: 5, kind: input, shape index: {}]   ;;  %s1947_s6 = inlined_call_operand.vmem [shape: f32[13,128], index: 6, kind: input, shape index: {}]   ;;  %s1948_s7 = inlined_call_operand.hbm [shape: f32[2,32], index: 7, kind: output, shape index: {}]  }
   0x1   :  { %v50_v0 = vld [vmem:[%s1942_s1 + $0x78] sm:$0xff]  ;;  %83 = vmatprep.subr.mxu0 %v1297_v1  ;;  %273 = vst [vmem:[#allocation3] sm:$0xff] %v1297_v1  ;;  %274 = vst [vmem:[#allocation3 + $0x8] sm:$0xff] %v1297_v1  ;;  %v49_v2 = vld [vmem:[%s1942_s1 + $0x70] sm:$0xff] }
   0x2   :  { %277 = vst [vmem:[#allocation3 + $0x18] sm:$0xff] %v1297_v1  ;;  %278 = vst [vmem:[#allocation3 + $0x20] sm:$0xff] %v1297_v1  ;;  %84 = vmatpush1.msra.mxu0 %v50_v0  ;;  %v48_v3 = vld [vmem:[%s1942_s1 + $0x68] sm:$0xff]  ;;  %v47_v4 = vld [vmem:[%s1942_s1 + $0x60] sm:$0xff] }
   0x3   :  { %85 = vmatprep.subr.mxu0 %v1297_v1  ;;  %v46_v5 = vld [vmem:[%s1942_s1 + $0x58] sm:$0xff]  ;;  %v45_v6 = vld [vmem:[%s1942_s1 + $0x50] sm:$0xff]  ;;  %v28_v7 = vld [vmem:[%s1941_s0 + $0x8] sm:$0xff] }
   0x4   :  { %86 = vmatpush1.msra.mxu0 %v49_v2  ;;  %v44_v8 = vld [vmem:[%s1942_s1 + $0x48] sm:$0xff]  ;;  %1032 = vmatprep.mubr.msk.f32.mxu0 %vm70_vm0, %v28_v7  ;;  %v43_v9 = vld [vmem:[%s1942_s1 + $0x40] sm:$0xff] }
   0x5   :  { %87 = vmatprep.subr.mxu0 %v1297_v1 }
   0x6   :  { %88 = vmatpush1.msra.mxu0 %v48_v3 }
   0x7   :  { %89 = vmatprep.subr.mxu0 %v1297_v1 }
   0x8   :  { %90 = vmatpush1.msra.mxu0 %v47_v4 }
   0x9   :  { %91 = vmatprep.subr.mxu0 %v1297_v1 }
   0xa   :  { %92 = vmatpush1.msra.mxu0 %v46_v5 }
   0xb   :  { %93 = vmatprep.subr.mxu0 %v1297_v1 }
   0xc   :  { %94 = vmatpush1.msra.mxu0 %v45_v6 }
   0xd   :  { %95 = vmatprep.subr.mxu0 %v1297_v1 }
   0xe   :  { %12 = vsyncpa [#allocation7], 0  ;;  %96 = vmatpush1.msra.mxu0 %v44_v8  ;;  %v42_v10 = vld [vmem:[%s1942_s1 + $0x38] sm:$0xff]  ;;  %v41_v11 = vld [vmem:[%s1942_s1 + $0x30] sm:$0xff]  ;;  %s1299_s11 = smov 16   ;;  %s1300_s12 = smov 32  }
   0xf   :  { %97 = vmatprep.subr.mxu0 %v1297_v1  ;;  %v40_v12 = vld [vmem:[%s1942_s1 + $0x28] sm:$0xff]  ;;  %v39_v13 = vld [vmem:[%s1942_s1 + $0x20] sm:$0xff]  ;;  %v38_v14 = vld [vmem:[%s1942_s1 + $0x18] sm:$0xff]  ;;  %s1301_s13 = smov 64   ;;  %vm275_vm5 = vcmask 523264   ;;  %vm309_vm6 = vcmask 521216  }
  0x10   :  { %98 = vmatpush1.msra.mxu0 %v43_v9  ;;  %v37_v15 = vld [vmem:[%s1942_s1 + $0x10] sm:$0xff]  ;;  %v36_v16 = vld [vmem:[%s1942_s1 + $0x8] sm:$0xff]  ;;  %v35_v17 = vld [vmem:[%s1942_s1] sm:$0xff]  ;;  %276 = vst.msk [vmem:[#allocation3 + $0x10] sm:$0xff] %vm275_vm5, %v1297_v1  ;;  %vm292_vm7 = vcmask 523266   ;;  %vm305_vm8 = vcmask 1047040  }
  0x11   :  { %99 = vmatprep.subr.mxu0 %v1297_v1  ;;  %v64_v18 = vld [vmem:[%s1942_s1 + $0xe8] sm:$0xff]  ;;  %v63_v19 = vld [vmem:[%s1942_s1 + $0xe0] sm:$0xff]  ;;  %v62_v20 = vld [vmem:[%s1942_s1 + $0xd8] sm:$0xff]  ;;  %279 = vst.msk [vmem:[#allocation3 + $0x28] sm:$0xff] %vm275_vm5, %v1297_v1  ;;  %vm298_vm9 = vcmask 1048065   ;;  %vm632_vm12 = vcmask 516096  }
  0x12   :  { %100 = vmatpush1.msra.mxu0 %v42_v10  ;;  %v61_v21 = vld [vmem:[%s1942_s1 + $0xd0] sm:$0xff]  ;;  %v60_v22 = vld [vmem:[%s1942_s1 + $0xc8] sm:$0xff]  ;;  %v59_v23 = vld [vmem:[%s1942_s1 + $0xc0] sm:$0xff]  ;;  %vm647_vm13 = vcmask 1040896   ;;  %vm1303_vm14 = vmmov 0   ;;  %s1304_s19 = smov [#allocation6]  }
  0x13   :  { %101 = vmatprep.subr.mxu0 %v1297_v1  ;;  %v58_v24 = vld [vmem:[%s1942_s1 + $0xb8] sm:$0xff]  ;;  %v57_v25 = vld [vmem:[%s1942_s1 + $0xb0] sm:$0xff]  ;;  %v56_v26 = vld [vmem:[%s1942_s1 + $0xa8] sm:$0xff]  ;;  %s1023_s20 = sshll.u32 %s1304_s19, 4  ;;  %s1024_s20 = int_to_ptr.vmem [resolvable:$true] %s1023_s20 }
  0x14   :  { %102 = vmatpush1.msra.mxu0 %v41_v11  ;;  %v55_v27 = vld [vmem:[%s1942_s1 + $0xa0] sm:$0xff]  ;;  %v54_v28 = vld [vmem:[%s1942_s1 + $0x98] sm:$0xff]  ;;  %v53_v29 = vld [vmem:[%s1942_s1 + $0x90] sm:$0xff]  ;;  %s1275_s21 = scalar_lea.vmem %s1024_s20, 32  ;;  %p1280_p1 = scmp.lt.s32.totalorder %s1024_s20, %s1024_s20 }
  0x15   :  { %103 = vmatprep.subr.mxu0 %v1297_v1  ;;  %v52_v30 = vld [vmem:[%s1942_s1 + $0x88] sm:$0xff]  ;;  %v51_v31 = vld [vmem:[%s1942_s1 + $0x80] sm:$0xff]  ;;  %v30_v33 = vld [vmem:[%s1941_s0 + $0x18] sm:$0xff]  ;;  %p1276_p0 = scmp.ne.s32.totalorder %s1024_s20, %s1275_s21  ;;  %p1281_p2 = scmp.lt.s32.totalorder %s1275_s21, %s1275_s21 }
  0x16   :  { %104 = vmatpush1.msra.mxu0 %v40_v12  ;;  %v27_v32 = vld [vmem:[%s1941_s0] sm:$0xff]  ;;  %v29_v34 = vld [vmem:[%s1941_s0 + $0x10] sm:$0xff]  ;;  %v32_v35 = vld [vmem:[%s1941_s0 + $0x28] sm:$0xff] }
  0x17   :  { %105 = vmatprep.subr.mxu0 %v1297_v1  ;;  %v31_v36 = vld [vmem:[%s1941_s0 + $0x20] sm:$0xff]  ;;  %v34_v37 = vld [vmem:[%s1941_s0 + $0x38] sm:$0xff]  ;;  %v33_v38 = vld [vmem:[%s1941_s0 + $0x30] sm:$0xff]  ;;  %s1298_s0 = smov 8   ;;  %p1282_p3 = por %p1281_p2, %p1280_p1 }
  0x18   :  { %106 = vmatpush1.msra.mxu0 %v39_v13  ;;  %v1031_v40 = vld [vmem:[%s1947_s6] ss:$0 sm:$0xff]  ;;  %v1036_v45 = vld [vmem:[%s1947_s6 + $0x9] ss:$0 sm:$0xff]  ;;  %v209_v13 = vlaneseq }
  0x19   :  { %107 = vmatprep.subr.mxu0 %v1297_v1  ;;  %p1283_p4 = pnand %p1282_p3, %p1276_p0 }
  0x1a   :  { %108 = vmatpush1.msra.mxu0 %v38_v14  ;;  %v1507_v14 = vshrl.u32 %v209_v13, 7 }
  0x1b   :  { %109 = vmatprep.subr.mxu0 %v1297_v1 }
  0x1c   :  { %110 = vmatpush1.msra.mxu0 %v37_v15 }
  0x1d   :  { %111 = vmatprep.subr.mxu0 %v1297_v1 }
  0x1e   :  { %112 = vmatpush1.msra.mxu0 %v36_v16  ;;  %v1510_v16 = vsub.s32 0, %v1507_v14 }
  0x1f   :  { %113 = vmatprep.subr.mxu0 %v1297_v1 }
  0x20   :  { %114 = vmatpush1.msra.mxu0 %v35_v17 }
  0x21   :  { %119 = vmatprep.subr.mxu0 %v1297_v1 }
  0x22   :  { %120 = vmatpush2.msra.mxu0 %v64_v18 }
  0x23   :  { %121 = vmatprep.subr.mxu0 %v1297_v1 }
  0x24   :  { %122 = vmatpush2.msra.mxu0 %v63_v19 }
  0x25   :  { %123 = vmatprep.subr.mxu0 %v1297_v1 }
  0x26   :  { %124 = vmatpush2.msra.mxu0 %v62_v20 }
  0x27   :  { %125 = vmatprep.subr.mxu0 %v1297_v1 }
  0x28   :  { %126 = vmatpush2.msra.mxu0 %v61_v21 }
  0x29   :  { %127 = vmatprep.subr.mxu0 %v1297_v1 }
  0x2a   :  { %128 = vmatpush2.msra.mxu0 %v60_v22 }
  0x2b   :  { %129 = vmatprep.subr.mxu0 %v1297_v1 }
  0x2c   :  { %130 = vmatpush2.msra.mxu0 %v59_v23 }
  0x2d   :  { %131 = vmatprep.subr.mxu0 %v1297_v1 }
  0x2e   :  { %132 = vmatpush2.msra.mxu0 %v58_v24 }
  0x2f   :  { %133 = vmatprep.subr.mxu0 %v1297_v1 }
  0x30   :  { %134 = vmatpush2.msra.mxu0 %v57_v25 }
  0x31   :  { %135 = vmatprep.subr.mxu0 %v1297_v1 }
  0x32   :  { %136 = vmatpush2.msra.mxu0 %v56_v26 }
  0x33   :  { %137 = vmatprep.subr.mxu0 %v1297_v1 }
  0x34   :  { %138 = vmatpush2.msra.mxu0 %v55_v27 }
  0x35   :  { %139 = vmatprep.subr.mxu0 %v1297_v1 }
  0x36   :  { %140 = vmatpush2.msra.mxu0 %v54_v28 }
  0x37   :  { %141 = vmatprep.subr.mxu0 %v1297_v1 }
  0x38   :  { %142 = vmatpush2.msra.mxu0 %v53_v29 }
  0x39   :  { %143 = vmatprep.subr.mxu0 %v1297_v1 }
  0x3a   :  { %144 = vmatpush2.msra.mxu0 %v52_v30 }
  0x3b   :  { %145 = vmatprep.subr.mxu0 %v1297_v1 }
  0x3c   :  { %146 = vmatpush2.msra.mxu0 %v51_v31 }
  0x3d   :  { %148 = vmatmul.mubr.f32.vlgmr.msra.gmra.mxu0 %v27_v32 }
  0x3e   :  { %1033 = vmatprep.mubr.msk.f32.mxu0 %vm70_vm0, %v30_v33 }
  0x41   :  { %153 = vmatmul.mubr.f32.gmra.mxu0 %v29_v34 }
  0x42   :  { %1034 = vmatprep.mubr.msk.f32.mxu0 %vm70_vm0, %v32_v35 }
  0x45   :  { %158 = vmatmul.mubr.f32.gmra.mxu0 %v31_v36 }
  0x46   :  { %1035 = vmatprep.mubr.msk.f32.mxu0 %vm70_vm0, %v34_v37 }
  0x49   :  { %163 = vmatmul.mubr.f32.gmra.mxu0 %v33_v38 }
  0xfd   :  { %v149_v39 = vpop.f32.mrf.mxu0 }
  0xfe   :  { %v150_v43 = vadd.f32 %v1031_v40, %v149_v39 }
  0xff   :  { %v151_v41 = vpop.f32.mrf.mxu0 }
 0x100   :  { %v177_v49 = vmul.f32 %v1036_v45, %v150_v43  ;;  %vm168_vm2 = vcmp.ge.f32.partialorder %v150_v43, 0.0 }
 0x101   :  { %v154_v42 = vpop.f32.mrf.mxu0 }
 0x102   :  { %v155_v44 = vadd.f32 %v1031_v40, %v154_v42  ;;  %v181_v55 = vsel %vm168_vm2, %v150_v43, %v177_v49  ;;  %v384_v43 = vld [vmem:[%s1943_s2 + $0x138] sm:$0xff] }
 0x103   :  { %v156_v46 = vpop.f32.mrf.mxu0  ;;  %1172 = vmatprep.subr.mxu0 %v384_v43 }
 0x104   :  { %v178_v47 = vmul.f32 %v1036_v45, %v155_v44  ;;  %vm169_vm1 = vcmp.ge.f32.partialorder %v155_v44, 0.0  ;;  %1173 = vmatpush3.msra.mxu0 %v384_v43  ;;  %v347_v43 = vld [vmem:[%s1943_s2 + $0x10] sm:$0xff] }
 0x105   :  { %v159_v48 = vpop.f32.mrf.mxu0 }
 0x106   :  { %v160_v50 = vadd.f32 %v1031_v40, %v159_v48  ;;  %v182_v52 = vsel %vm169_vm1, %v155_v44, %v178_v47  ;;  %v383_v44 = vld [vmem:[%s1943_s2 + $0x130] sm:$0xff]  ;;  %vm1010_vm1 = vcmask 254976  }
 0x107   :  { %v161_v51 = vpop.f32.mrf.mxu0  ;;  %v187_v58 = vadd.f32 %v182_v52, %v181_v55  ;;  %1174 = vmatprep.subr.mxu0 %v383_v44 }
 0x108   :  { %vm170_vm3 = vcmp.ge.f32.partialorder %v160_v50, 0.0  ;;  %v179_v53 = vmul.f32 %v1036_v45, %v160_v50  ;;  %1175 = vmatpush3.msra.mxu0 %v383_v44  ;;  %v1037_v51 = vld [vmem:[%s1947_s6 + $0x1] ss:$0 sm:$0xff]  ;;  %v362_v44 = vld [vmem:[%s1943_s2 + $0x88] sm:$0xff] }
 0x109   :  { %v164_v54 = vpop.f32.mrf.mxu0 }
 0x10a   :  { %v183_v56 = vsel %vm170_vm3, %v160_v50, %v179_v53  ;;  %v165_v57 = vadd.f32 %v1031_v40, %v164_v54 }
 0x10b   :  { %v166_v59 = vpop.f32.mrf.mxu0  ;;  %v188_v61 = vadd.f32 %v187_v58, %v183_v56 }
 0x10c   :  { %vm171_vm4 = vcmp.ge.f32.partialorder %v165_v57, 0.0  ;;  %v180_v60 = vmul.f32 %v1036_v45, %v165_v57 }
 0x10e   :  { %v184_v62 = vsel %vm171_vm4, %v165_v57, %v180_v60 }
 0x10f   :  { %v189_v63 = vadd.f32 %v188_v61, %v184_v62 }
 0x111   :  { %v190_v0 = vrot.slane %v189_v63, 4 }
 0x113   :  { %v191_v2 = vadd.f32 %v190_v0, %v189_v63 }
 0x115   :  { %v192_v3 = vrot.slane %v191_v2, 2 }
 0x117   :  { %v193_v4 = vadd.f32 %v192_v3, %v191_v2  ;;  %v382_v2 = vld [vmem:[%s1943_s2 + $0x128] sm:$0xff]  ;;  %v381_v3 = vld [vmem:[%s1943_s2 + $0x120] sm:$0xff] }
 0x118   :  { %1176 = vmatprep.subr.mxu0 %v382_v2 }
 0x119   :  { %v194_v5 = vrot.slane %v193_v4, 1  ;;  %1177 = vmatpush3.msra.mxu0 %v382_v2 }
 0x11a   :  { %1178 = vmatprep.subr.mxu0 %v381_v3 }
 0x11b   :  { %v195_v6 = vadd.f32 %v194_v5, %v193_v4  ;;  %1179 = vmatpush3.msra.mxu0 %v381_v3  ;;  %v380_v4 = vld [vmem:[%s1943_s2 + $0x118] sm:$0xff]  ;;  %v379_v5 = vld [vmem:[%s1943_s2 + $0x110] sm:$0xff] }
 0x11c   :  { %1180 = vmatprep.subr.mxu0 %v380_v4 }
 0x11d   :  { %196 = vrot.lane.b32.xlu0 %v195_v6, %s1298_s0  ;;  %1181 = vmatpush3.msra.mxu0 %v380_v4 }
 0x11e   :  { %1182 = vmatprep.subr.mxu0 %v379_v5 }
 0x11f   :  { %1183 = vmatpush3.msra.mxu0 %v379_v5 }
 0x18f   :  { %v197_v7 = vpop.permute.xlu0 %196 }
 0x190   :  { %v198_v8 = vadd.f32 %v197_v7, %v195_v6  ;;  %v378_v6 = vld [vmem:[%s1943_s2 + $0x108] sm:$0xff]  ;;  %v377_v7 = vld [vmem:[%s1943_s2 + $0x100] sm:$0xff] }
 0x191   :  { %1184 = vmatprep.subr.mxu0 %v378_v6 }
 0x192   :  { %199 = vrot.lane.b32.xlu0 %v198_v8, %s1299_s11  ;;  %1185 = vmatpush3.msra.mxu0 %v378_v6 }
 0x193   :  { %1186 = vmatprep.subr.mxu0 %v377_v7 }
 0x194   :  { %1187 = vmatpush3.msra.mxu0 %v377_v7 }
 0x195   :  { %1191 = vmatprep.subr.mxu0 %v1297_v1 }
 0x204   :  { %v200_v9 = vpop.permute.xlu0 %199 }
 0x205   :  { %v201_v10 = vadd.f32 %v200_v9, %v198_v8 }
 0x207   :  { %202 = vrot.lane.b32.xlu1 %v201_v10, %s1300_s12 }
 0x279   :  { %v203_v11 = vpop.permute.xlu1 %202 }
 0x27a   :  { %v204_v12 = vadd.f32 %v203_v11, %v201_v10 }
 0x27c   :  { %205 = vrot.lane.b32.xlu1 %v204_v12, %s1301_s13 }
 0x2ee   :  { %v206_v15 = vpop.permute.xlu1 %205 }
 0x2ef   :  { %v207_v17 = vadd.f32 %v206_v15, %v204_v12  ;;  %v376_v15 = vld [vmem:[%s1943_s2 + $0xf8] sm:$0xff] }
 0x2f0   :  { %1055 = vmatprep.subr.mxu1 %v376_v15 }
 0x2f1   :  { %v208_v18 = vmul.f32 0.001953125, %v207_v17  ;;  %v360_v17 = vld [vmem:[%s1943_s2 + $0x78] sm:$0xff] }
 0x2f2   :  { %1056 = vmatpush3.msra.mxu1 %v360_v17 }
 0x2f3   :  { %v212_v19 = vrot.slane %v208_v18, %v1510_v16  ;;  %v375_v18 = vld [vmem:[%s1943_s2 + $0xf0] sm:$0xff] }
 0x2f4   :  { %1057 = vmatprep.subr.mxu1 %v375_v18 }
 0x2f5   :  { %v213_v20 = vsub.f32 %v181_v55, %v212_v19  ;;  %v214_v21 = vsub.f32 %v182_v52, %v212_v19  ;;  %v215_v22 = vsub.f32 %v183_v56, %v212_v19  ;;  %v216_v23 = vsub.f32 %v184_v62, %v212_v19  ;;  %v1038_v56 = vld [vmem:[%s1947_s6 + $0x2] ss:$0 sm:$0xff]  ;;  %v359_v19 = vld [vmem:[%s1943_s2 + $0x70] sm:$0xff] }
 0x2f6   :  { %1058 = vmatpush3.msra.mxu1 %v359_v19 }
 0x2f7   :  { %v217_v24 = vmul.f32 %v213_v20, %v213_v20  ;;  %v218_v25 = vmul.f32 %v214_v21, %v214_v21  ;;  %v219_v26 = vmul.f32 %v215_v22, %v215_v22  ;;  %v220_v28 = vmul.f32 %v216_v23, %v216_v23 }
 0x2f9   :  { %v221_v27 = vadd.f32 %v218_v25, %v217_v24  ;;  %v372_v24 = vld [vmem:[%s1943_s2 + $0xd8] sm:$0xff] }
 0x2fa   :  { %v356_v25 = vld [vmem:[%s1943_s2 + $0x58] sm:$0xff] }
 0x2fb   :  { %v222_v29 = vadd.f32 %v221_v27, %v219_v26  ;;  %v371_v26 = vld [vmem:[%s1943_s2 + $0xd0] sm:$0xff] }
 0x2fc   :  { %v355_v27 = vld [vmem:[%s1943_s2 + $0x50] sm:$0xff] }
 0x2fd   :  { %v223_v30 = vadd.f32 %v222_v29, %v220_v28  ;;  %v370_v28 = vld [vmem:[%s1943_s2 + $0xc8] sm:$0xff] }
 0x2fe   :  { %v354_v29 = vld [vmem:[%s1943_s2 + $0x48] sm:$0xff] }
 0x2ff   :  { %v224_v31 = vrot.slane %v223_v30, 4 }
 0x301   :  { %v225_v32 = vadd.f32 %v224_v31, %v223_v30  ;;  %v369_v30 = vld [vmem:[%s1943_s2 + $0xc0] sm:$0xff] }
 0x302   :  { %v353_v31 = vld [vmem:[%s1943_s2 + $0x40] sm:$0xff] }
 0x303   :  { %v226_v33 = vrot.slane %v225_v32, 2 }
 0x305   :  { %v227_v34 = vadd.f32 %v226_v33, %v225_v32  ;;  %v368_v32 = vld [vmem:[%s1943_s2 + $0xb8] sm:$0xff] }
 0x306   :  { %v352_v33 = vld [vmem:[%s1943_s2 + $0x38] sm:$0xff] }
 0x307   :  { %v228_v35 = vrot.slane %v227_v34, 1 }
 0x309   :  { %v229_v36 = vadd.f32 %v228_v35, %v227_v34  ;;  %v367_v34 = vld [vmem:[%s1943_s2 + $0xb0] sm:$0xff] }
 0x30a   :  { %v351_v35 = vld [vmem:[%s1943_s2 + $0x30] sm:$0xff] }
 0x30b   :  { %230 = vrot.lane.b32.xlu0 %v229_v36, %s1298_s0 }
 0x37d   :  { %v231_v37 = vpop.permute.xlu0 %230 }
 0x37e   :  { %v232_v38 = vadd.f32 %v231_v37, %v229_v36  ;;  %v366_v36 = vld [vmem:[%s1943_s2 + $0xa8] sm:$0xff] }
 0x37f   :  { %v350_v37 = vld [vmem:[%s1943_s2 + $0x28] sm:$0xff] }
 0x380   :  { %233 = vrot.lane.b32.xlu1 %v232_v38, %s1299_s11 }
 0x3f2   :  { %v234_v39 = vpop.permute.xlu1 %233 }
 0x3f3   :  { %v235_v40 = vadd.f32 %v234_v39, %v232_v38  ;;  %v365_v38 = vld [vmem:[%s1943_s2 + $0xa0] sm:$0xff] }
 0x3f4   :  { %v349_v39 = vld [vmem:[%s1943_s2 + $0x20] sm:$0xff] }
 0x3f5   :  { %236 = vrot.lane.b32.xlu0 %v235_v40, %s1300_s12 }
 0x467   :  { %v237_v41 = vpop.permute.xlu0 %236 }
 0x468   :  { %v238_v42 = vadd.f32 %v237_v41, %v235_v40  ;;  %v364_v40 = vld [vmem:[%s1943_s2 + $0x98] sm:$0xff] }
 0x469   :  { %v348_v41 = vld [vmem:[%s1943_s2 + $0x18] sm:$0xff] }
 0x46a   :  { %239 = vrot.lane.b32.xlu1 %v238_v42, %s1301_s13 }
 0x4dc   :  { %v240_v45 = vpop.permute.xlu1 %239 }
 0x4dd   :  { %v241_v46 = vadd.f32 %v240_v45, %v238_v42  ;;  %v363_v42 = vld [vmem:[%s1943_s2 + $0x90] sm:$0xff]  ;;  %v346_v45 = vld [vmem:[%s1943_s2 + $0x8] sm:$0xff] }
 0x4df   :  { %v242_v47 = vmul.f32 0.001953125, %v241_v46  ;;  %v361_v46 = vld [vmem:[%s1943_s2 + $0x80] sm:$0xff] }
 0x4e1   :  { %v243_v48 = vadd.f32 1e-05, %v242_v47  ;;  %v345_v47 = vld [vmem:[%s1943_s2] sm:$0xff] }
 0x4e3   :  { %1269 = vrsqrt.f32 %v243_v48 }
 0x4f0   :  { %v1270_v49 = vpop.eup %1269 }
 0x4f1   :  { %v248_v50 = vrot.slane %v1270_v49, %v1510_v16 }
 0x4f3   :  { %v249_v52 = vmul.f32 %v248_v50, %v213_v20  ;;  %v250_v53 = vmul.f32 %v248_v50, %v214_v21  ;;  %v251_v54 = vmul.f32 %v248_v50, %v215_v22  ;;  %v252_v55 = vmul.f32 %v248_v50, %v216_v23  ;;  %v374_v20 = vld [vmem:[%s1943_s2 + $0xe8] sm:$0xff]  ;;  %v373_v22 = vld [vmem:[%s1943_s2 + $0xe0] sm:$0xff] }
 0x4f4   :  { %v358_v21 = vld [vmem:[%s1943_s2 + $0x68] sm:$0xff]  ;;  %1059 = vmatprep.subr.mxu1 %v374_v20  ;;  %v357_v23 = vld [vmem:[%s1943_s2 + $0x60] sm:$0xff] }
 0x4f5   :  { %v257_v57 = vmul.f32 %v1037_v51, %v249_v52  ;;  %v258_v58 = vmul.f32 %v1037_v51, %v250_v53  ;;  %v259_v59 = vmul.f32 %v1037_v51, %v251_v54  ;;  %v260_v60 = vmul.f32 %v1037_v51, %v252_v55  ;;  %1060 = vmatpush3.msra.mxu1 %v358_v21  ;;  %v1042_v20 = vld [vmem:[%s1947_s6 + $0xa] ss:$0 sm:$0xff] }
 0x4f6   :  { %1061 = vmatprep.subr.mxu1 %v373_v22 }
 0x4f7   :  { %v265_v61 = vadd.f32 %v1038_v56, %v257_v57  ;;  %v266_v62 = vadd.f32 %v1038_v56, %v258_v58  ;;  %v267_v63 = vadd.f32 %v1038_v56, %v259_v59  ;;  %v268_v0 = vadd.f32 %v1038_v56, %v260_v60  ;;  %1062 = vmatpush3.msra.mxu1 %v357_v23 }
 0x4f8   :  { %1063 = vmatprep.subr.mxu1 %v372_v24 }
 0x4f9   :  { %269 = vst [vmem:[#allocation2] sm:$0xff] %v265_v61  ;;  %270 = vst [vmem:[#allocation2 + $0x8] sm:$0xff] %v266_v62  ;;  %1064 = vmatpush3.msra.mxu1 %v356_v25 }
 0x4fa   :  { %271 = vst [vmem:[#allocation2 + $0x10] sm:$0xff] %v267_v63  ;;  %272 = vst [vmem:[#allocation2 + $0x18] sm:$0xff] %v268_v0  ;;  %1065 = vmatprep.subr.mxu1 %v371_v26 }
 0x4fb   :  { %1066 = vmatpush3.msra.mxu1 %v355_v27 }
 0x4fc   :  { %1067 = vmatprep.subr.mxu1 %v370_v28 }
 0x4fd   :  { %1068 = vmatpush3.msra.mxu1 %v354_v29 }
 0x4fe   :  { %1069 = vmatprep.subr.mxu1 %v369_v30 }
 0x4ff   :  { %1070 = vmatpush3.msra.mxu1 %v353_v31 }
 0x500   :  { %v280_v10 = vld [vmem:[#allocation2] ss:$2 sm:$0xff]  ;;  %v282_v12 = vld [vmem:[#allocation2 + $0x1] ss:$2 sm:$0xff]  ;;  %1071 = vmatprep.subr.mxu1 %v368_v32 }
 0x501   :  { %v312_v8 = vld [vmem:[#allocation2 + $0x10] ss:$2 sm:$0xff]  ;;  %v314_v9 = vld [vmem:[#allocation2 + $0x11] ss:$2 sm:$0xff]  ;;  %v1554_v13 = vmax.f32 %v280_v10, %v282_v12  ;;  %1072 = vmatpush3.msra.mxu1 %v352_v33 }
 0x502   :  { %v1552_v11 = vmax.f32 %v312_v8, %v314_v9  ;;  %1073 = vmatprep.subr.mxu1 %v367_v34  ;;  %v1039_v9 = vld [vmem:[%s1947_s6 + $0x3] ss:$0 sm:$0xff] }
 0x503   :  { %285 = vrot.lane.b32.xlu0 %v1554_v13, %s1301_s13  ;;  %1074 = vmatpush3.msra.mxu1 %v351_v35 }
 0x504   :  { %317 = vrot.lane.b32.xlu1 %v1552_v11, %s1301_s13  ;;  %1075 = vmatprep.subr.mxu1 %v366_v36 }
 0x505   :  { %1076 = vmatpush3.msra.mxu1 %v350_v37 }
 0x506   :  { %1077 = vmatprep.subr.mxu1 %v365_v38 }
 0x507   :  { %1078 = vmatpush3.msra.mxu1 %v349_v39 }
 0x508   :  { %1079 = vmatprep.subr.mxu1 %v364_v40 }
 0x509   :  { %1080 = vmatpush3.msra.mxu1 %v348_v41 }
 0x50a   :  { %1081 = vmatprep.subr.mxu1 %v363_v42 }
 0x50b   :  { %1082 = vmatpush3.msra.mxu1 %v347_v43 }
 0x50c   :  { %1083 = vmatprep.subr.mxu1 %v362_v44 }
 0x50d   :  { %1084 = vmatpush3.msra.mxu1 %v346_v45 }
 0x50e   :  { %1085 = vmatprep.subr.mxu1 %v361_v46 }
 0x50f   :  { %1086 = vmatpush3.msra.mxu1 %v345_v47 }
 0x575   :  { %v286_v50 = vpop.permute.xlu0 %285 }
 0x576   :  { %v318_v48 = vpop.permute.xlu1 %317  ;;  %v288_v51 = vmax.f32 %v1554_v13, %v286_v50 }
 0x577   :  { %v320_v49 = vmax.f32 %v1552_v11, %v318_v48 }
 0x578   :  { %v307_v54 = vrot.slane %v288_v51, 2  ;;  %v301_v55 = vrot.slane %v288_v51, 1  ;;  %v294_v56 = vrot.slane %v288_v51, 7  ;;  %300 = vst.msk [vmem:[#allocation3 + $0x8] sm:$0xff] %vm275_vm5, %v288_v51  ;;  %v290_v57 = vrot.slane %v288_v51, 6 }
 0x579   :  { %v336_v52 = vrot.slane %v320_v49, 2  ;;  %330 = vst.msk [vmem:[#allocation3 + $0x20] sm:$0xff] %vm275_vm5, %v320_v49  ;;  %v322_v53 = vrot.slane %v320_v49, 6  ;;  %v331_v58 = vrot.slane %v320_v49, 1  ;;  %v325_v59 = vrot.slane %v320_v49, 7 }
 0x57a   :  { %302 = vrot.lane.b32.xlu0 %v301_v55, %s1301_s13  ;;  %295 = vrot.lane.b32.xlu1 %v294_v56, %s1301_s13  ;;  %310 = vst.msk [vmem:[#allocation3 + $0x10] sm:$0x3f] %vm309_vm6, %v307_v54 }
 0x57b   :  { %338 = vst.msk [vmem:[#allocation3 + $0x28] sm:$0x3f] %vm309_vm6, %v336_v52 }
 0x57c   :  { %324 = vst.msk [vmem:[#allocation3 + $0x18] sm:$0xfc] %vm292_vm7, %v322_v53  ;;  %293 = vst.msk [vmem:[#allocation3] sm:$0xfc] %vm292_vm7, %v290_v57 }
 0x57e   :  { %332 = vrot.lane.b32.xlu0 %v331_v58, %s1301_s13  ;;  %326 = vrot.lane.b32.xlu1 %v325_v59, %s1301_s13 }
 0x581   :  { %v341_v61 = vld [vmem:[#allocation3 + $0x10] sm:$0xff] }
 0x582   :  { %v344_v60 = vld [vmem:[#allocation3 + $0x28] sm:$0xff]  ;;  %1188 = vmatprep.mubr.msk.f32.mxu0 %vm275_vm5, %v341_v61 }
 0x583   :  { %1189 = vmatmul.mubr.msk.f32.vlgmr.msra.gmra.mxu0 %vm275_vm5, %v344_v60 }
 0x584   :  { %1223 = vmatprep.mubr.msk.f32.mxu0 %vm1303_vm14, %v1297_v1 }
 0x5ec   :  { %v303_v62 = vpop.permute.xlu0 %302  ;;  %v296_v63 = vpop.permute.xlu1 %295 }
 0x5ed   :  { %306 = vst.msk [vmem:[#allocation3 + $0x8] sm:$0x7f] %vm305_vm8, %v303_v62 }
 0x5ee   :  { %299 = vst.msk [vmem:[#allocation3] sm:$0xfe] %vm298_vm9, %v296_v63  ;;  %v1043_v63 = vld [vmem:[%s1947_s6 + $0x4] ss:$0 sm:$0xff] }
 0x5f0   :  { %v333_v0 = vpop.permute.xlu0 %332  ;;  %v327_v2 = vpop.permute.xlu1 %326 }
 0x5f1   :  { %335 = vst.msk [vmem:[#allocation3 + $0x20] sm:$0x7f] %vm305_vm8, %v333_v0 }
 0x5f2   :  { %329 = vst.msk [vmem:[#allocation3 + $0x18] sm:$0xfe] %vm298_vm9, %v327_v2 }
 0x5f4   :  { %v340_v3 = vld [vmem:[#allocation3 + $0x8] sm:$0xff] }
 0x5f5   :  { %v339_v4 = vld [vmem:[#allocation3] sm:$0xff]  ;;  %460 = vmatprep.mubr.f32.mxu1 %v340_v3 }
 0x5f6   :  { %461 = vmatmul.mubr.f32.vlgmr.msra.gmra.mxu1 %v339_v4  ;;  %v1044_v3 = vld [vmem:[%s1947_s6 + $0x5] ss:$0 sm:$0xff] }
 0x5f8   :  { %v343_v5 = vld [vmem:[#allocation3 + $0x20] sm:$0xff] }
 0x5f9   :  { %v342_v6 = vld [vmem:[#allocation3 + $0x18] sm:$0xff]  ;;  %465 = vmatprep.mubr.f32.mxu1 %v343_v5 }
 0x5fa   :  { %466 = vmatmul.mubr.f32.gmra.mxu1 %v342_v6 }
 0x643   :  { %v1190_v8 = vpop.f32.mrf.mxu0 }
 0x645   :  { %v537_v15 = vpop.f32.mrf.mxu0 }
 0x6b6   :  { %v1087_v7 = vpop.f32.mrf.mxu1 }
 0x6b8   :  { %v1088_v10 = vpop.f32.mrf.mxu1 }
 0x6b9   :  { %v1089_v11 = vadd.f32 %v1088_v10, %v1087_v7 }
 0x6ba   :  { %v1090_v12 = vpop.f32.mrf.mxu1 }
 0x6bb   :  { %v463_v13 = vadd.f32 %v1089_v11, %v1039_v9 }
 0x6bc   :  { %v1091_v17 = vpop.f32.mrf.mxu1 }
 0x6bd   :  { %v538_v18 = vadd.f32 %v537_v15, %v463_v13  ;;  %v1092_v19 = vadd.f32 %v1091_v17, %v1090_v12  ;;  %v724_v13 = vld [vmem:[%s1944_s3 + $0xf8] sm:$0xff]  ;;  %v723_v17 = vld [vmem:[%s1944_s3 + $0xf0] sm:$0xff] }
 0x6be   :  { %v708_v15 = vld [vmem:[%s1944_s3 + $0x78] sm:$0xff]  ;;  %1103 = vmatprep.subr.mxu1 %v724_v13 }
 0x6bf   :  { %v468_v21 = vadd.f32 %v1092_v19, %v1039_v9  ;;  %v553_v22 = vmul.f32 %v1042_v20, %v538_v18  ;;  %vm546_vm10 = vcmp.ge.f32.partialorder %v538_v18, 0.0  ;;  %1104 = vmatpush3.msra.mxu1 %v708_v15  ;;  %v722_v19 = vld [vmem:[%s1944_s3 + $0xe8] sm:$0xff] }
 0x6c0   :  { %1105 = vmatprep.subr.mxu1 %v723_v17  ;;  %v823_v17 = vld [vmem:[%s1945_s4 + $0x20] sm:$0xff] }
 0x6c1   :  { %v543_v23 = vadd.f32 %v1190_v8, %v468_v21  ;;  %v555_v25 = vsel %vm546_vm10, %v538_v18, %v553_v22  ;;  %v707_v18 = vld [vmem:[%s1944_s3 + $0x70] sm:$0xff]  ;;  %v721_v21 = vld [vmem:[%s1944_s3 + $0xe0] sm:$0xff] }
 0x6c2   :  { %1106 = vmatpush3.msra.mxu1 %v707_v18  ;;  %v705_v22 = vld [vmem:[%s1944_s3 + $0x60] sm:$0xff]  ;;  %v822_v18 = vld [vmem:[%s1945_s4 + $0x18] sm:$0xff] }
 0x6c3   :  { %vm547_vm11 = vcmp.ge.f32.partialorder %v543_v23, 0.0  ;;  %v554_v24 = vmul.f32 %v1042_v20, %v543_v23  ;;  %v706_v20 = vld [vmem:[%s1944_s3 + $0x68] sm:$0xff]  ;;  %1107 = vmatprep.subr.mxu1 %v722_v19  ;;  %v821_v19 = vld [vmem:[%s1945_s4 + $0x10] sm:$0xff] }
 0x6c4   :  { %1108 = vmatpush3.msra.mxu1 %v706_v20  ;;  %v820_v20 = vld [vmem:[%s1945_s4 + $0x8] sm:$0xff] }
 0x6c5   :  { %v556_v26 = vsel %vm547_vm11, %v543_v23, %v554_v24  ;;  %v720_v23 = vld [vmem:[%s1944_s3 + $0xd8] sm:$0xff]  ;;  %1109 = vmatprep.subr.mxu1 %v721_v21  ;;  %v819_v21 = vld [vmem:[%s1945_s4] sm:$0xff] }
 0x6c6   :  { %v559_v27 = vadd.f32 %v556_v26, %v555_v25  ;;  %v704_v24 = vld [vmem:[%s1944_s3 + $0x58] sm:$0xff]  ;;  %1110 = vmatpush3.msra.mxu1 %v705_v22 }
 0x6c7   :  { %1111 = vmatprep.subr.mxu1 %v720_v23  ;;  %v933_v22 = vld [vmem:[%s1946_s5 + $0x78] sm:$0xff]  ;;  %v932_v23 = vld [vmem:[%s1946_s5 + $0x70] sm:$0xff] }
 0x6c8   :  { %v560_v28 = vrot.slane %v559_v27, 4  ;;  %1112 = vmatpush3.msra.mxu1 %v704_v24  ;;  %v931_v24 = vld [vmem:[%s1946_s5 + $0x68] sm:$0xff] }
 0x6ca   :  { %v561_v29 = vadd.f32 %v560_v28, %v559_v27  ;;  %v718_v27 = vld [vmem:[%s1944_s3 + $0xc8] sm:$0xff] }
 0x6cb   :  { %v702_v28 = vld [vmem:[%s1944_s3 + $0x48] sm:$0xff] }
 0x6cc   :  { %v562_v30 = vrot.slane %v561_v29, 2 }
 0x6ce   :  { %v563_v31 = vadd.f32 %v562_v30, %v561_v29  ;;  %v717_v29 = vld [vmem:[%s1944_s3 + $0xc0] sm:$0xff]  ;;  %v1302_v30 = vmov 1983009808  }
 0x6d0   :  { %v564_v32 = vrot.slane %v563_v31, 1 }
 0x6d2   :  { %v565_v33 = vadd.f32 %v564_v32, %v563_v31  ;;  %v636_v31 = vunpack.c.l.s4 %v1302_v30  ;;  %v701_v32 = vld [vmem:[%s1944_s3 + $0x40] sm:$0xff]  ;;  %v925_v30 = vld [vmem:[%s1946_s5 + $0x38] sm:$0xff] }
 0x6d4   :  { %566 = vrot.lane.b32.xlu0 %v565_v33, %s1299_s11 }
 0x746   :  { %v567_v34 = vpop.permute.xlu0 %566 }
 0x747   :  { %v568_v35 = vadd.f32 %v567_v34, %v565_v33  ;;  %v637_v33 = vunpack.c.0.s8 %v636_v31  ;;  %v716_v34 = vld [vmem:[%s1944_s3 + $0xb8] sm:$0xff]  ;;  %v924_v31 = vld [vmem:[%s1946_s5 + $0x30] sm:$0xff] }
 0x749   :  { %569 = vrot.lane.b32.xlu1 %v568_v35, %s1300_s12 }
 0x7bb   :  { %v570_v36 = vpop.permute.xlu1 %569 }
 0x7bc   :  { %v571_v37 = vadd.f32 %v570_v36, %v568_v35  ;;  %v700_v35 = vld [vmem:[%s1944_s3 + $0x38] sm:$0xff]  ;;  %v715_v36 = vld [vmem:[%s1944_s3 + $0xb0] sm:$0xff] }
 0x7be   :  { %572 = vrot.lane.b32.xlu0 %v571_v37, %s1301_s13 }
 0x830   :  { %v573_v38 = vpop.permute.xlu0 %572 }
 0x831   :  { %v574_v39 = vadd.f32 %v573_v38, %v571_v37  ;;  %v699_v37 = vld [vmem:[%s1944_s3 + $0x30] sm:$0xff]  ;;  %v640_v38 = vsub.s32 %v637_v33, %v1507_v14  ;;  %v697_v14 = vld [vmem:[%s1944_s3 + $0x20] sm:$0xff] }
 0x832   :  { %v922_v33 = vld [vmem:[%s1946_s5 + $0x20] sm:$0xff] }
 0x833   :  { %v575_v40 = vmul.f32 0.0078125, %v574_v39  ;;  %v714_v39 = vld [vmem:[%s1944_s3 + $0xa8] sm:$0xff] }
 0x835   :  { %v579_v41 = vrot.slane %v575_v40, %v1510_v16 }
 0x837   :  { %v580_v42 = vsub.f32 %v555_v25, %v579_v41  ;;  %v581_v43 = vsub.f32 %v556_v26, %v579_v41  ;;  %v719_v25 = vld [vmem:[%s1944_s3 + $0xd0] sm:$0xff]  ;;  %v698_v41 = vld [vmem:[%s1944_s3 + $0x28] sm:$0xff] }
 0x838   :  { %v703_v26 = vld [vmem:[%s1944_s3 + $0x50] sm:$0xff]  ;;  %1113 = vmatprep.subr.mxu1 %v719_v25  ;;  %v930_v25 = vld [vmem:[%s1946_s5 + $0x60] sm:$0xff] }
 0x839   :  { %v582_v44 = vmul.f32 %v580_v42, %v580_v42  ;;  %v583_v45 = vmul.f32 %v581_v43, %v581_v43  ;;  %1114 = vmatpush3.msra.mxu1 %v703_v26  ;;  %v929_v26 = vld [vmem:[%s1946_s5 + $0x58] sm:$0xff] }
 0x83a   :  { %1115 = vmatprep.subr.mxu1 %v718_v27  ;;  %v928_v27 = vld [vmem:[%s1946_s5 + $0x50] sm:$0xff] }
 0x83b   :  { %v584_v46 = vadd.f32 %v583_v45, %v582_v44  ;;  %1116 = vmatpush3.msra.mxu1 %v702_v28  ;;  %v713_v44 = vld [vmem:[%s1944_s3 + $0xa0] sm:$0xff]  ;;  %v712_v45 = vld [vmem:[%s1944_s3 + $0x98] sm:$0xff]  ;;  %v927_v28 = vld [vmem:[%s1946_s5 + $0x48] sm:$0xff] }
 0x83c   :  { %1117 = vmatprep.subr.mxu1 %v717_v29  ;;  %v926_v29 = vld [vmem:[%s1946_s5 + $0x40] sm:$0xff] }
 0x83d   :  { %v585_v47 = vrot.slane %v584_v46, 4  ;;  %1118 = vmatpush3.msra.mxu1 %v701_v32  ;;  %v923_v32 = vld [vmem:[%s1946_s5 + $0x28] sm:$0xff] }
 0x83e   :  { %1119 = vmatprep.subr.mxu1 %v716_v34  ;;  %v921_v34 = vld [vmem:[%s1946_s5 + $0x18] sm:$0xff] }
 0x83f   :  { %v586_v48 = vadd.f32 %v585_v47, %v584_v46  ;;  %1120 = vmatpush3.msra.mxu1 %v700_v35  ;;  %v696_v47 = vld [vmem:[%s1944_s3 + $0x18] sm:$0xff] }
 0x840   :  { %1121 = vmatprep.subr.mxu1 %v715_v36  ;;  %v1049_v36 = vld [vmem:[%s1947_s6 + $0x6] ss:$0 sm:$0xff] }
 0x841   :  { %v587_v49 = vrot.slane %v586_v48, 2  ;;  %1122 = vmatpush3.msra.mxu1 %v699_v37 }
 0x842   :  { %1123 = vmatprep.subr.mxu1 %v714_v39  ;;  %v1051_v39 = vld [vmem:[%s1947_s6 + $0xb] ss:$0 sm:$0xff] }
 0x843   :  { %v588_v50 = vadd.f32 %v587_v49, %v586_v48  ;;  %1124 = vmatpush3.msra.mxu1 %v698_v41  ;;  %v711_v49 = vld [vmem:[%s1944_s3 + $0x90] sm:$0xff] }
 0x844   :  { %1125 = vmatprep.subr.mxu1 %v713_v44  ;;  %v919_v44 = vld [vmem:[%s1946_s5 + $0x8] sm:$0xff] }
 0x845   :  { %v589_v51 = vrot.slane %v588_v50, 1  ;;  %1126 = vmatpush3.msra.mxu1 %v697_v14  ;;  %v918_v14 = vld [vmem:[%s1946_s5] sm:$0xff] }
 0x846   :  { %1127 = vmatprep.subr.mxu1 %v712_v45  ;;  %v1052_v45 = vld [vmem:[%s1947_s6 + $0x7] ss:$0 sm:$0xff] }
 0x847   :  { %v590_v52 = vadd.f32 %v589_v51, %v588_v50  ;;  %v695_v51 = vld [vmem:[%s1944_s3 + $0x10] sm:$0xff]  ;;  %1128 = vmatpush3.msra.mxu1 %v696_v47  ;;  %v1053_v47 = vld [vmem:[%s1947_s6 + $0xc] ss:$0 sm:$0xff] }
 0x848   :  { %1129 = vmatprep.subr.mxu1 %v711_v49 }
 0x849   :  { %591 = vrot.lane.b32.xlu1 %v590_v52, %s1299_s11  ;;  %1130 = vmatpush3.msra.mxu1 %v695_v51 }
 0x8bb   :  { %v592_v53 = vpop.permute.xlu1 %591 }
 0x8bc   :  { %v593_v54 = vadd.f32 %v592_v53, %v590_v52  ;;  %v710_v53 = vld [vmem:[%s1944_s3 + $0x88] sm:$0xff] }
 0x8bd   :  { %1131 = vmatprep.subr.mxu1 %v710_v53 }
 0x8be   :  { %594 = vrot.lane.b32.xlu0 %v593_v54, %s1300_s12 }
 0x930   :  { %v595_v55 = vpop.permute.xlu0 %594 }
 0x931   :  { %v596_v56 = vadd.f32 %v595_v55, %v593_v54 }
 0x933   :  { %597 = vrot.lane.b32.xlu1 %v596_v56, %s1301_s13 }
 0x9a5   :  { %v598_v57 = vpop.permute.xlu1 %597 }
 0x9a6   :  { %v599_v58 = vadd.f32 %v598_v57, %v596_v56  ;;  %v694_v56 = vld [vmem:[%s1944_s3 + $0x8] sm:$0xff]  ;;  %v709_v57 = vld [vmem:[%s1944_s3 + $0x80] sm:$0xff] }
 0x9a7   :  { %1132 = vmatpush3.msra.mxu1 %v694_v56 }
 0x9a8   :  { %v600_v59 = vmul.f32 0.0078125, %v599_v58  ;;  %1133 = vmatprep.subr.mxu1 %v709_v57 }
 0x9aa   :  { %v601_v60 = vadd.f32 1e-05, %v600_v59  ;;  %v693_v59 = vld [vmem:[%s1944_s3] sm:$0xff] }
 0x9ab   :  { %1134 = vmatpush3.msra.mxu1 %v693_v59 }
 0x9ac   :  { %1271 = vrsqrt.f32 %v601_v60  ;;  %1226 = vmatprep.subr.mxu1 %v1297_v1 }
 0x9b9   :  { %v1272_v61 = vpop.eup %1271 }
 0x9ba   :  { %v606_v62 = vrot.slane %v1272_v61, %v1510_v16 }
 0x9bc   :  { %v607_v0 = vmul.f32 %v606_v62, %v580_v42  ;;  %v608_v2 = vmul.f32 %v606_v62, %v581_v43  ;;  %v834_v62 = vld [vmem:[%s1945_s4 + $0x78] sm:$0xff] }
 0x9bd   :  { %1192 = vmatpush3.msra.mxu0 %v834_v62 }
 0x9be   :  { %v613_v4 = vmul.f32 %v1043_v63, %v607_v0  ;;  %v614_v5 = vmul.f32 %v1043_v63, %v608_v2  ;;  %v833_v63 = vld [vmem:[%s1945_s4 + $0x70] sm:$0xff]  ;;  %1193 = vmatprep.subr.mxu0 %v1297_v1  ;;  %v832_v0 = vld [vmem:[%s1945_s4 + $0x68] sm:$0xff]  ;;  %v831_v2 = vld [vmem:[%s1945_s4 + $0x60] sm:$0xff] }
 0x9bf   :  { %1194 = vmatpush3.msra.mxu0 %v833_v63 }
 0x9c0   :  { %v619_v6 = vadd.f32 %v1044_v3, %v613_v4  ;;  %v620_v7 = vadd.f32 %v1044_v3, %v614_v5  ;;  %1195 = vmatprep.subr.mxu0 %v1297_v1  ;;  %v830_v3 = vld [vmem:[%s1945_s4 + $0x58] sm:$0xff]  ;;  %v829_v4 = vld [vmem:[%s1945_s4 + $0x50] sm:$0xff]  ;;  %v828_v5 = vld [vmem:[%s1945_s4 + $0x48] sm:$0xff] }
 0x9c1   :  { %1196 = vmatpush3.msra.mxu0 %v832_v0 }
 0x9c2   :  { %621 = vst [vmem:[#allocation4] sm:$0xff] %v619_v6  ;;  %622 = vst [vmem:[#allocation4 + $0x8] sm:$0xff] %v620_v7  ;;  %1197 = vmatprep.subr.mxu0 %v1297_v1  ;;  %v827_v6 = vld [vmem:[%s1945_s4 + $0x40] sm:$0xff]  ;;  %v826_v7 = vld [vmem:[%s1945_s4 + $0x38] sm:$0xff] }
 0x9c3   :  { %1198 = vmatpush3.msra.mxu0 %v831_v2 }
 0x9c4   :  { %1199 = vmatprep.subr.mxu0 %v1297_v1 }
 0x9c5   :  { %1200 = vmatpush3.msra.mxu0 %v830_v3 }
 0x9c6   :  { %1201 = vmatprep.subr.mxu0 %v1297_v1 }
 0x9c7   :  { %1202 = vmatpush3.msra.mxu0 %v829_v4 }
 0x9c8   :  { %1203 = vmatprep.subr.mxu0 %v1297_v1 }
 0x9c9   :  { %v659_v8 = vld [vmem:[#allocation4 + $0x8] ss:$2 sm:$0xf]  ;;  %v661_v9 = vld [vmem:[#allocation4 + $0x9] ss:$2 sm:$0xf]  ;;  %1204 = vmatpush3.msra.mxu0 %v828_v5 }
 0x9ca   :  { %v662_v10 = vmax.f32 %v659_v8, %v661_v9  ;;  %v623_v16 = vld [vmem:[#allocation4] ss:$2 sm:$0xf]  ;;  %v625_v11 = vld [vmem:[#allocation4 + $0x1] ss:$2 sm:$0xf]  ;;  %1205 = vmatprep.subr.mxu0 %v1297_v1 }
 0x9cb   :  { %v626_v12 = vmax.f32 %v623_v16, %v625_v11  ;;  %1206 = vmatpush3.msra.mxu0 %v827_v6  ;;  %v825_v8 = vld [vmem:[%s1945_s4 + $0x30] sm:$0xff]  ;;  %v824_v9 = vld [vmem:[%s1945_s4 + $0x28] sm:$0xff] }
 0x9cc   :  { %664 = vrot.lane.b32.xlu1 %v662_v10, %s1301_s13  ;;  %1207 = vmatprep.subr.mxu0 %v1297_v1 }
 0x9cd   :  { %628 = vrot.lane.b32.xlu0 %v626_v12, %s1301_s13  ;;  %1208 = vmatpush3.msra.mxu0 %v826_v7 }
 0x9ce   :  { %1209 = vmatprep.subr.mxu0 %v1297_v1 }
 0x9cf   :  { %1210 = vmatpush3.msra.mxu0 %v825_v8 }
 0x9d0   :  { %1211 = vmatprep.subr.mxu0 %v1297_v1 }
 0x9d1   :  { %1212 = vmatpush3.msra.mxu0 %v824_v9 }
 0x9d2   :  { %1213 = vmatprep.subr.mxu0 %v1297_v1 }
 0x9d3   :  { %1214 = vmatpush3.msra.mxu0 %v823_v17 }
 0x9d4   :  { %1215 = vmatprep.subr.mxu0 %v1297_v1 }
 0x9d5   :  { %1216 = vmatpush3.msra.mxu0 %v822_v18 }
 0x9d6   :  { %1217 = vmatprep.subr.mxu0 %v1297_v1 }
 0x9d7   :  { %1218 = vmatpush3.msra.mxu0 %v821_v19 }
 0x9d8   :  { %1219 = vmatprep.subr.mxu0 %v1297_v1 }
 0x9d9   :  { %1220 = vmatpush3.msra.mxu0 %v820_v20 }
 0x9da   :  { %1221 = vmatprep.subr.mxu0 %v1297_v1 }
 0x9db   :  { %1222 = vmatpush3.msra.mxu0 %v819_v21 }
 0xa3e   :  { %v665_v40 = vpop.permute.xlu1 %664 }
 0xa3f   :  { %v667_v42 = vmax.f32 %v662_v10, %v665_v40  ;;  %v629_v43 = vpop.permute.xlu0 %628 }
 0xa40   :  { %v631_v46 = vmax.f32 %v626_v12, %v629_v43  ;;  %v920_v43 = vld [vmem:[%s1946_s5 + $0x10] sm:$0xff] }
 0xa41   :  { %668 = vst.msk [vmem:[#allocation5 + $0x1] sm:$0x1] %vm632_vm12, %v667_v42  ;;  %v676_v48 = vrot.slane %v667_v42, %v640_v38 }
 0xa42   :  { %633 = vst.msk [vmem:[#allocation5] sm:$0x1] %vm632_vm12, %v631_v46  ;;  %v641_v50 = vrot.slane %v631_v46, %v640_v38 }
 0xa43   :  { %v683_v52 = vcombine.high %v676_v48, %v676_v48  ;;  %v1047_v60 = vrot.slane %v676_v48, 9 }
 0xa44   :  { %v649_v54 = vcombine.high %v641_v50, %v641_v50  ;;  %v1045_v55 = vrot.slane %v641_v50, 9 }
 0xa45   :  { %685 = vst.msk [vmem:[#allocation5 + $0x3] sm:$0x1] %vm632_vm12, %v683_v52  ;;  %v1048_v61 = vrot.slane %v683_v52, 9 }
 0xa46   :  { %651 = vst.msk [vmem:[#allocation5 + $0x2] sm:$0x1] %vm632_vm12, %v649_v54  ;;  %644 = vrot.lane.b32.xlu0 %v1045_v55, %s1301_s13  ;;  %v1046_v58 = vrot.slane %v649_v54, 9 }
 0xa48   :  { %654 = vrot.lane.b32.xlu1 %v1046_v58, %s1301_s13 }
 0xa4a   :  { %679 = vrot.lane.b32.xlu0 %v1047_v60, %s1301_s13 }
 0xa4c   :  { %688 = vrot.lane.b32.xlu1 %v1048_v61, %s1301_s13 }
 0xab8   :  { %v645_v10 = vpop.permute.xlu0 %644 }
 0xab9   :  { %648 = vst.msk [vmem:[#allocation5] sm:$0x1] %vm647_vm13, %v645_v10 }
 0xaba   :  { %v655_v16 = vpop.permute.xlu1 %654 }
 0xabb   :  { %657 = vst.msk [vmem:[#allocation5 + $0x2] sm:$0x1] %vm647_vm13, %v655_v16 }
 0xabc   :  { %v680_v11 = vpop.permute.xlu0 %679 }
 0xabd   :  { %682 = vst.msk [vmem:[#allocation5 + $0x1] sm:$0x1] %vm647_vm13, %v680_v11 }
 0xabe   :  { %v689_v12 = vpop.permute.xlu1 %688 }
 0xabf   :  { %691 = vst.msk [vmem:[#allocation5 + $0x3] sm:$0x1] %vm647_vm13, %v689_v12 }
 0xac6   :  { %v1050_v13 = vld.sshfl [vmem:[#allocation5] sm:$0x33 pattern:$0x76325410] }
 0xac7   :  { %v738_v15 = vcombine.high %v1050_v13, %v1050_v13 }
 0xac9   :  { %805 = vmatprep.mubr.f32.mxu1 %v738_v15 }
 0xaca   :  { %806 = vmatmul.mubr.f32.vlgmr.msra.gmra.mxu1 %v1050_v13 }
 0xacb   :  { %1258 = vmatprep.mubr.msk.f32.mxu1 %vm1303_vm14, %v1297_v1  ;;  %1227 = vmatpush3.msra.mxu1 %v933_v22 }
 0xacc   :  { %1228 = vmatprep.subr.mxu1 %v1297_v1 }
 0xacd   :  { %1229 = vmatpush3.msra.mxu1 %v932_v23 }
 0xace   :  { %1230 = vmatprep.subr.mxu1 %v1297_v1 }
 0xacf   :  { %1231 = vmatpush3.msra.mxu1 %v931_v24 }
 0xad0   :  { %1232 = vmatprep.subr.mxu1 %v1297_v1 }
 0xad1   :  { %1233 = vmatpush3.msra.mxu1 %v930_v25 }
 0xad2   :  { %1234 = vmatprep.subr.mxu1 %v1297_v1 }
 0xad3   :  { %1235 = vmatpush3.msra.mxu1 %v929_v26 }
 0xad4   :  { %1236 = vmatprep.subr.mxu1 %v1297_v1 }
 0xad5   :  { %1237 = vmatpush3.msra.mxu1 %v928_v27 }
 0xad6   :  { %1238 = vmatprep.subr.mxu1 %v1297_v1 }
 0xad7   :  { %1239 = vmatpush3.msra.mxu1 %v927_v28 }
 0xad8   :  { %1240 = vmatprep.subr.mxu1 %v1297_v1 }
 0xad9   :  { %1241 = vmatpush3.msra.mxu1 %v926_v29 }
 0xada   :  { %1242 = vmatprep.subr.mxu1 %v1297_v1 }
 0xadb   :  { %1243 = vmatpush3.msra.mxu1 %v925_v30 }
 0xadc   :  { %1244 = vmatprep.subr.mxu1 %v1297_v1 }
 0xadd   :  { %1245 = vmatpush3.msra.mxu1 %v924_v31 }
 0xade   :  { %1246 = vmatprep.subr.mxu1 %v1297_v1 }
 0xadf   :  { %1247 = vmatpush3.msra.mxu1 %v923_v32 }
 0xae0   :  { %1248 = vmatprep.subr.mxu1 %v1297_v1 }
 0xae1   :  { %1249 = vmatpush3.msra.mxu1 %v922_v33 }
 0xae2   :  { %1250 = vmatprep.subr.mxu1 %v1297_v1 }
 0xae3   :  { %1251 = vmatpush3.msra.mxu1 %v921_v34 }
 0xae4   :  { %1252 = vmatprep.subr.mxu1 %v1297_v1 }
 0xae5   :  { %1253 = vmatpush3.msra.mxu1 %v920_v43 }
 0xae6   :  { %1254 = vmatprep.subr.mxu1 %v1297_v1 }
 0xae7   :  { %1255 = vmatpush3.msra.mxu1 %v919_v44 }
 0xae8   :  { %1256 = vmatprep.subr.mxu1 %v1297_v1  ;;  %v1054_v1 = vld [vmem:[%s1947_s6 + $0x8] ss:$0 sm:$0xff] }
 0xae9   :  { %1257 = vmatpush3.msra.mxu1 %v918_v14 }
 0xb8a   :  { %v1135_v35 = vpop.f32.mrf.mxu1 }
 0xb8c   :  { %v1136_v37 = vpop.f32.mrf.mxu1 }
 0xb8d   :  { %v1137_v38 = vadd.f32 %v1136_v37, %v1135_v35 }
 0xb8f   :  { %v808_v40 = vadd.f32 %v1137_v38, %v1049_v36 }
 0xb91   :  { %v817_v41 = vmul.f32 %v1051_v39, %v808_v40  ;;  %vm811_vm15 = vcmp.ge.f32.partialorder %v808_v40, 0.0 }
 0xb93   :  { %v818_v42 = vsel %vm811_vm15, %v808_v40, %v817_v41 }
 0xb94   :  { %1224 = vmatmul.mubr.f32.vlgmr.msra.gmra.mxu0 %v818_v42 }
 0xc54   :  { %v906_v46 = vpop.f32.mrf.mxu0 }
 0xc55   :  { %v907_v48 = vadd.f32 %v1052_v45, %v906_v46 }
 0xc56   :  { %v1225_v49 = vpop.f32.mrf.mxu0 }
 0xc57   :  { %vm910_vm0 = vcmp.ge.f32.partialorder %v907_v48, 0.0  ;;  %v916_v50 = vmul.f32 %v1053_v47, %v907_v48 }
 0xc59   :  { %v917_v51 = vsel %vm910_vm0, %v907_v48, %v916_v50 }
 0xc5a   :  { %1259 = vmatmul.mubr.f32.vlgmr.msra.gmra.mxu1 %v917_v51 }
 0xd1a   :  { %v1005_v52 = vpop.f32.mrf.mxu1 }
 0xd1b   :  { %v1006_v53 = vadd.f32 %v1054_v1, %v1005_v52 }
 0xd1c   :  { %v1260_v54 = vpop.f32.mrf.mxu1 }
 0xd1d   :  { %v1009_v55 = vmul.f32 %v1006_v53, %v1006_v53 }
 0xd1f   :  { %v1011_v56 = vsel %vm1010_vm1, %v1009_v55, 0.0 }
 0xd20   :  { %1012 = vadd.xlane.f32.xlu0 %v1011_v56 }
 0xda9   :  { %v1013_v57 = vpop.xlane.xlu0 %1012 }
 0xdaa   :  { %1273 = vrsqrt.f32 %v1013_v57 }
 0xdb7   :  { %v1274_v58 = vpop.eup %1273 }
 0xdb8   :  { %v1015_v59 = vmul.f32 %v1274_v58, %v1006_v53 }
 0xdba   :  { %1016 = vst.msk [vmem:[#allocation6] sm:$0x3] %vm1010_vm1, %v1015_v59 }
 0xdbb   :  { %1286 = shalt.err (!%p1283_p4)
}
 0xdbc   :  { %1026 = dma.vmem_to_hbm [thread:$0]  %s1024_s20, 32, %s1948_s7, [#allocation7]  }
 0xdbd   :  { %1295 = dma.done.wait [#allocation7], 32  }
 0xdbe   :  { %1296 = vsyncadd [#allocation7], 4294967264 }
 0xdbf   :  { %1030 = vsyncpa [#allocation7], 1 }

</bundles_post_ra>
